<compile_context>
chip_gen: v5e
topology: v5e:2x2
jax: 0.10.0
libtpu: 0.0.40
codegen_flags: <defaults>
</compile_context>

<pallas_src>
import functools
import math

import jax
import jax.numpy as jnp
from jax.experimental import pallas as pl
from jax.experimental.pallas import tpu as pltpu

# ---- config (mirrors the fields of the PyTorch config used by the module) ----
NUM_LAYERS = 2
HIDDEN = 32
NUM_HEADS = 4
HEAD_DIM = HIDDEN // NUM_HEADS
INTERMEDIATE = 64
NUM_TASKS = 2            # size of the graph-mask "task" axis (dim 1 of `heads`)
LN_EPS = 1e-12

# MXU operand dtype. TODO(synk): flip to jnp.bfloat16 on v6e/v7x once the 1e-4
# check vs. the f32 reference is relaxed (accumulation stays f32 either way).
MATMUL_DTYPE = jnp.float32

# rows of the packed per-layer vector slab (order shared by kernel & wrapper)
_VEC_ROWS = ("bo", "ln1_g", "ln1_b", "bi", "bo2", "ln2_g", "ln2_b")
_VEC_WIDTH = 128   # one lane-aligned row per vector, zero-padded


def _layer_norm(x, gamma, beta, eps):
    mu = jnp.mean(x, axis=-1, keepdims=True)
    var = jnp.mean((x - mu) ** 2, axis=-1, keepdims=True)
    return (x - mu) * jax.lax.rsqrt(var + eps) * gamma + beta


_GELU_INV_SQRT2 = 1.0 / math.sqrt(2.0)


def _erf_approx(x):
    # Abramowitz & Stegun 7.1.26 (max abs error 1.5e-7): keeps the kernel's GELU
    # within 1e-4 of the exact erf-based BERT "gelu" while using only ops Mosaic
    # lowers cheaply (exp -> EUP, mul/add/compare/select -> VPU).
    a1, a2, a3, a4, a5 = (0.254829592, -0.284496736, 1.421413741,
                          -1.453152027, 1.061405429)
    p = 0.3275911
    ax = jnp.abs(x)
    t = 1.0 / (1.0 + p * ax)
    poly = ((((a5 * t + a4) * t + a3) * t + a2) * t + a1) * t
    y = 1.0 - poly * jnp.exp(-ax * ax)
    return jnp.where(x >= 0, y, -y)


def _gelu_exact(x):
    # HF BERT default "gelu" is the exact erf form (per the correctness review).
    return 0.5 * x * (1.0 + _erf_approx(x * _GELU_INV_SQRT2))


# ----------------------------- Pallas kernel ---------------------------------
def bert_graph_mask_encoder_kernel(
    x_ref, mask_ref,
    wqkv_ref, bqkv_ref, wo_ref, wi_ref, wo2_ref, vec_ref,
    out_ref,
    *, num_layers, seq, hidden, inter, num_heads, head_dim, num_tasks, eps):
    """One grid step = one batch element; all encoder layers unrolled inside."""
    x = x_ref[0].astype(jnp.float32)             # (S, H)   residual stream
    mask = mask_ref[0].astype(jnp.float32)       # (T, S, S) additive graph mask
    mm = MATMUL_DTYPE
    inv_sqrt_d = 1.0 / math.sqrt(head_dim)
    inv_sqrt_t = 1.0 / math.sqrt(num_tasks)      # torch.div(..., sqrt(context.size(2)))

    for l in range(num_layers):                  # static unroll: layer fusion

        def vec(name, width, l=l):
            r = _VEC_ROWS.index(name)
            return vec_ref[l, r:r + 1, 0:width]  # (1, width) static prefix slice

        # --- GraphMaskAttention -------------------------------------------------
        # Head-batched Q/K/V projection: the per-head weight packing (done once in
        # the wrapper) makes heads come out already separated -- no lane slicing,
        # no stack, no transpose/reshape of activations.
        xb = jnp.broadcast_to(x[None], (num_heads, seq, hidden))          # (nH,S,H)
        qkv = jnp.einsum('nsh,nhd->nsd',
                         xb.astype(mm), wqkv_ref[l].astype(mm),
                         preferred_element_type=jnp.float32) + bqkv_ref[l]  # (nH,S,3dH)
        q = qkv[:, :, 0:head_dim]
        k = qkv[:, :, head_dim:2 * head_dim]
        v = qkv[:, :, 2 * head_dim:3 * head_dim]

        scores = jnp.einsum('nqd,nkd->nqk', q.astype(mm), k.astype(mm),
                            preferred_element_type=jnp.float32) * inv_sqrt_d  # (nH,S,S)

        # Single softmax pass over the folded (head, task) axes, then task sum:
        # (sum_t softmax(scores + mask_t)) @ V == sum_t (softmax_t @ V).
        s_all = scores[:, None, :, :] + mask[None, :, :, :]                # (nH,T,S,S)
        m = jnp.max(s_all, axis=-1, keepdims=True)
        e = jnp.exp(s_all - m)
        # exact reciprocal keeps the 1e-4 check; pl.reciprocal(approx=True) is the
        # EUP option once the tolerance is relaxed (per review).
        p = e * (1.0 / jnp.sum(e, axis=-1, keepdims=True))                 # dropout = id
        p_sum = jnp.sum(p, axis=1)                                         # (nH,S,S)

        ctx = jnp.einsum('nqk,nkd->nqd', p_sum.astype(mm), v.astype(mm),
                         preferred_element_type=jnp.float32) * inv_sqrt_t  # (nH,S,dH)

        # Head merge fused into the attention-output dense: sum_n ctx_n @ Wo_n
        # (replaces the per-head concatenate of the previous version).
        attn = jnp.sum(
            jnp.einsum('nqd,ndh->nqh', ctx.astype(mm), wo_ref[l].astype(mm),
                       preferred_element_type=jnp.float32),
            axis=0) + vec("bo", hidden)                                    # (S,H)

        # --- BertSelfOutput: residual + LayerNorm -------------------------------
        x1 = _layer_norm(attn + x, vec("ln1_g", hidden), vec("ln1_b", hidden), eps)

        # --- BertIntermediate: dense + exact GELU -------------------------------
        h = jnp.dot(x1.astype(mm), wi_ref[l].astype(mm),
                    preferred_element_type=jnp.float32) + vec("bi", inter)
        h = _gelu_exact(h)

        # --- BertOutput: dense + residual + LayerNorm ---------------------------
        o = jnp.dot(h.astype(mm), wo2_ref[l].astype(mm),
                    preferred_element_type=jnp.float32) + vec("bo2", hidden)
        x = _layer_norm(o + x1, vec("ln2_g", hidden), vec("ln2_b", hidden), eps)

    # At H=32 this is one (masked) vst; at production H (multiple of 128) the
    # same spec is fully lane-dense.  See TODO at the top for small-H slabs.
    out_ref[0] = x.astype(out_ref.dtype)


# ------------------------------ wrapper ---------------------------------------
def bert_graph_mask_encoder(hidden_states, graph_mask, stacked):
    """head_mask = [None]*L -> head-mask multiply is a no-op; outputs = (hidden,)."""
    B, S, H = hidden_states.shape
    T = graph_mask.shape[1]
    L, NH, _, three_dh = stacked["wqkv_h"].shape
    dh = three_dh // 3
    I = stacked["wi"].shape[2]

    kernel = functools.partial(
        bert_graph_mask_encoder_kernel,
        num_layers=L, seq=S, hidden=H, inter=I,
        num_heads=NH, head_dim=dh, num_tasks=T, eps=LN_EPS)

    weight_names = ("wqkv_h", "bqkv_h", "wo_h", "wi", "wo2", "vecs")
    weights = [stacked[name] for name in weight_names]

    def resident(shape):
        # constant index_map: fetched once, stays VMEM-resident across grid steps
        n = len(shape)
        return pl.BlockSpec(shape, lambda b, n=n: (0,) * n)

    out = pl.pallas_call(
        kernel,
        out_shape=jax.ShapeDtypeStruct((B, S, H), hidden_states.dtype),
        grid=(B,),                                     # one step per batch element
        in_specs=[pl.BlockSpec((1, S, H), lambda b: (b, 0, 0)),
                  pl.BlockSpec((1, T, S, S), lambda b: (b, 0, 0, 0))]
                 + [resident(w.shape) for w in weights],
        out_specs=pl.BlockSpec((1, S, H), lambda b: (b, 0, 0)),
        compiler_params=pltpu.CompilerParams(
            dimension_semantics=("parallel",),          # megacore shards the batch
            vmem_limit_bytes=64 * 1024 * 1024),         # explicit scoped-VMEM budget
    )(hidden_states, graph_mask, *weights)

    return (out,)


# --------------------------- deterministic params ------------------------------
def init_layer_params(key):
    ks = jax.random.split(key, 6)

    def lin(k, din, dout):
        kw, kb = jax.random.split(k)
        w = jax.random.normal(kw, (din, dout), jnp.float32) * 0.02
        b = jax.random.normal(kb, (1, dout), jnp.float32) * 0.02
        return w, b

    wq, bq = lin(ks[0], HIDDEN, HIDDEN)
    wk, bk = lin(ks[1], HIDDEN, HIDDEN)
    wv, bv = lin(ks[2], HIDDEN, HIDDEN)
    wo, bo = lin(ks[3], HIDDEN, HIDDEN)
    wi, bi = lin(ks[4], HIDDEN, INTERMEDIATE)
    wo2, bo2 = lin(ks[5], INTERMEDIATE, HIDDEN)
    ones = jnp.ones((1, HIDDEN), jnp.float32)
    zeros = jnp.zeros((1, HIDDEN), jnp.float32)
    return dict(wq=wq, bq=bq, wk=wk, bk=bk, wv=wv, bv=bv,
                wo=wo, bo=bo, ln1_g=ones, ln1_b=zeros,
                wi=wi, bi=bi, wo2=wo2, bo2=bo2, ln2_g=ones, ln2_b=zeros)


def _pad_row(v, width=_VEC_WIDTH):
    v = jnp.asarray(v).reshape(-1)
    assert v.shape[0] <= width, "vector wider than the packed-slab row"
    return jnp.pad(v, (0, width - v.shape[0]))


def stack_params(layer_params):
    """Per-head-pack Q/K/V and Wo, pack the small vectors into one lane-aligned
    slab, and stack everything with a leading layer axis (14 refs -> 8)."""
    def per_layer(p):
        bq, bk, bv = p["bq"][0], p["bk"][0], p["bv"][0]
        wqkv_h, bqkv_h, wo_h = [], [], []
        for n in range(NUM_HEADS):
            c = slice(n * HEAD_DIM, (n + 1) * HEAD_DIM)
            wqkv_h.append(jnp.concatenate(
                [p["wq"][:, c], p["wk"][:, c], p["wv"][:, c]], axis=1))    # (H, 3dH)
            bqkv_h.append(jnp.concatenate([bq[c], bk[c], bv[c]])[None, :])  # (1, 3dH)
            wo_h.append(p["wo"][c, :])                                      # (dH, H)
        rows = jnp.stack([_pad_row(p[name]) for name in _VEC_ROWS])         # (7, 128)
        rows = jnp.pad(rows, ((0, 8 - rows.shape[0]), (0, 0)))              # full 8x128 tile
        return (jnp.stack(wqkv_h), jnp.stack(bqkv_h), jnp.stack(wo_h),
                p["wi"], p["wo2"], rows)

    parts = [per_layer(p) for p in layer_params]
    names = ("wqkv_h", "bqkv_h", "wo_h", "wi", "wo2", "vecs")
    return {name: jnp.stack([pt[i] for pt in parts]) for i, name in enumerate(names)}


# ----------------------------- pure-JAX reference ------------------------------
def ref_layer(h, mask, p):
    B, S, H = h.shape
    T = mask.shape[1]

    def split_heads(x):
        return x.reshape(B, S, NUM_HEADS, HEAD_DIM).transpose(0, 2, 1, 3)

    q = split_heads(h @ p["wq"] + p["bq"])
    k = split_heads(h @ p["wk"] + p["bk"])
    v = split_heads(h @ p["wv"] + p["bv"])
    scores = jnp.einsum("bnqd,bnkd->bnqk", q, k) / math.sqrt(HEAD_DIM)
    scores = scores[:, :, None] + mask[:, None]               # (B,nH,T,S,S)
    probs = jax.nn.softmax(scores, axis=-1)
    ctx = jnp.einsum("bntqk,bnkd->bntqd", probs, v)
    ctx = ctx.sum(axis=2) / math.sqrt(T)                      # (B,nH,S,dH)
    ctx = ctx.transpose(0, 2, 1, 3).reshape(B, S, H)
    x1 = _layer_norm(ctx @ p["wo"] + p["bo"] + h, p["ln1_g"], p["ln1_b"], LN_EPS)
    inter = jax.nn.gelu(x1 @ p["wi"] + p["bi"], approximate=False)  # exact erf GELU
    return _layer_norm(inter @ p["wo2"] + p["bo2"] + x1, p["ln2_g"], p["ln2_b"], LN_EPS)


# ---------------------------------- driver -------------------------------------
if __name__ == "__main__":
    B, S = 2, 8
    key = jax.random.PRNGKey(0)
    k_h, k_m, k_p = jax.random.split(key, 3)

    hidden = jax.random.normal(k_h, (B, S, HIDDEN), jnp.float32)
    keep = jax.random.bernoulli(k_m, 0.75, (B, NUM_TASKS, S, S))
    graph_mask = jnp.where(keep, 0.0, -10000.0).astype(jnp.float32)  # additive "heads" mask
    layer_params = [init_layer_params(k) for k in jax.random.split(k_p, NUM_LAYERS)]
    stacked = stack_params(layer_params)

    out = bert_graph_mask_encoder(hidden, graph_mask, stacked)[0]
    out = jax.block_until_ready(out)

    # verify against the pure-JAX reference of the same math
    ref = hidden
    for p in layer_params:
        ref = ref_layer(ref, graph_mask, p)
    max_err = float(jnp.max(jnp.abs(out - ref)))
    assert jnp.allclose(out, ref, atol=1e-4, rtol=1e-4), f"max abs err {max_err}"

    print("KERNEL_OK")
</pallas_src>

<mosaic_0001>
module attributes {stable_mosaic.version = 11 : i64} {
  func.func @bert_graph_mask_encoder_kernel(%arg0: i32, %arg1: memref<1x8x32xf32, #tpu.memory_space<vmem>>, %arg2: memref<1x2x8x8xf32, #tpu.memory_space<vmem>>, %arg3: memref<2x4x32x24xf32, #tpu.memory_space<vmem>>, %arg4: memref<2x4x1x24xf32, #tpu.memory_space<vmem>>, %arg5: memref<2x4x8x32xf32, #tpu.memory_space<vmem>>, %arg6: memref<2x32x64xf32, #tpu.memory_space<vmem>>, %arg7: memref<2x64x32xf32, #tpu.memory_space<vmem>>, %arg8: memref<2x8x128xf32, #tpu.memory_space<vmem>>, %arg9: memref<1x8x32xf32, #tpu.memory_space<vmem>>) attributes {dimension_semantics = [#tpu.dimension_semantics<parallel>], iteration_bounds = array<i64: 2>, scalar_prefetch = 0 : i64, scratch_operands = 0 : i64, tpu.core_type = #tpu.core_type<tc>, window_params = [{transform_indices = @transform_0, window_bounds = array<i64: 1, 8, 32>}, {transform_indices = @transform_1, window_bounds = array<i64: 1, 2, 8, 8>}, {pipeline_mode = #tpu.pipeline_mode<synchronous>, transform_indices = @transform_2, window_bounds = array<i64: 2, 4, 32, 24>}, {pipeline_mode = #tpu.pipeline_mode<synchronous>, transform_indices = @transform_3, window_bounds = array<i64: 2, 4, 1, 24>}, {pipeline_mode = #tpu.pipeline_mode<synchronous>, transform_indices = @transform_4, window_bounds = array<i64: 2, 4, 8, 32>}, {pipeline_mode = #tpu.pipeline_mode<synchronous>, transform_indices = @transform_5, window_bounds = array<i64: 2, 32, 64>}, {pipeline_mode = #tpu.pipeline_mode<synchronous>, transform_indices = @transform_6, window_bounds = array<i64: 2, 64, 32>}, {pipeline_mode = #tpu.pipeline_mode<synchronous>, transform_indices = @transform_7, window_bounds = array<i64: 2, 8, 128>}, {transform_indices = @transform_8, window_bounds = array<i64: 1, 8, 32>}]} {
    %c0 = arith.constant 0 : index
    %c0_0 = arith.constant 0 : index
    %c0_1 = arith.constant 0 : index
    %0 = vector.load %arg1[%c0, %c0_0, %c0_1] : memref<1x8x32xf32, #tpu.memory_space<vmem>>, vector<1x8x32xf32>
    %1 = vector.shape_cast %0 : vector<1x8x32xf32> to vector<8x32xf32>
    %c0_2 = arith.constant 0 : index
    %c0_3 = arith.constant 0 : index
    %c0_4 = arith.constant 0 : index
    %c0_5 = arith.constant 0 : index
    %2 = vector.load %arg2[%c0_2, %c0_3, %c0_4, %c0_5] : memref<1x2x8x8xf32, #tpu.memory_space<vmem>>, vector<1x2x8x8xf32>
    %3 = vector.shape_cast %2 : vector<1x2x8x8xf32> to vector<2x8x8xf32>
    %4 = vector.shape_cast %1 : vector<8x32xf32> to vector<1x8x32xf32>
    %5 = vector.shape_cast %4 : vector<1x8x32xf32> to vector<1x8x32xf32>
    %6 = vector.broadcast %5 : vector<1x8x32xf32> to vector<4x8x32xf32>
    %c0_6 = arith.constant 0 : index
    %c0_7 = arith.constant 0 : index
    %c0_8 = arith.constant 0 : index
    %c0_9 = arith.constant 0 : index
    %7 = vector.load %arg3[%c0_6, %c0_7, %c0_8, %c0_9] : memref<2x4x32x24xf32, #tpu.memory_space<vmem>>, vector<1x4x32x24xf32>
    %8 = vector.shape_cast %7 : vector<1x4x32x24xf32> to vector<4x32x24xf32>
    "tpu.trace_start"() <{level = 10 : i32, message = "nsh,nhd->nsd"}> : () -> ()
    %cst = arith.constant dense<0.000000e+00> : vector<4x8x24xf32>
    %9 = tpu.matmul %6, %8, %cst {dimension_numbers = #tpu.dot_dimension_numbers<[2], [1], [1], [2], [0, 0, 0, 1, 1, 2], [0], [0]>} : vector<4x8x32xf32>, vector<4x32x24xf32>, vector<4x8x24xf32> -> vector<4x8x24xf32>
    "tpu.trace_stop"() : () -> ()
    %c0_10 = arith.constant 0 : index
    %c0_11 = arith.constant 0 : index
    %c0_12 = arith.constant 0 : index
    %c0_13 = arith.constant 0 : index
    %10 = vector.load %arg4[%c0_10, %c0_11, %c0_12, %c0_13] : memref<2x4x1x24xf32, #tpu.memory_space<vmem>>, vector<1x4x1x24xf32>
    %11 = vector.shape_cast %10 : vector<1x4x1x24xf32> to vector<4x1x24xf32>
    %12 = vector.broadcast %11 : vector<4x1x24xf32> to vector<4x8x24xf32>
    %13 = arith.addf %9, %12 : vector<4x8x24xf32>
    %14 = vector.extract_strided_slice %13 {offsets = [0, 0, 0], sizes = [4, 8, 8], strides = [1, 1, 1]} : vector<4x8x24xf32> to vector<4x8x8xf32>
    %15 = vector.extract_strided_slice %13 {offsets = [0, 0, 8], sizes = [4, 8, 8], strides = [1, 1, 1]} : vector<4x8x24xf32> to vector<4x8x8xf32>
    %16 = vector.extract_strided_slice %13 {offsets = [0, 0, 16], sizes = [4, 8, 8], strides = [1, 1, 1]} : vector<4x8x24xf32> to vector<4x8x8xf32>
    "tpu.trace_start"() <{level = 10 : i32, message = "nqd,nkd->nqk"}> : () -> ()
    %cst_14 = arith.constant dense<0.000000e+00> : vector<4x8x8xf32>
    %17 = tpu.matmul %14, %15, %cst_14 {dimension_numbers = #tpu.dot_dimension_numbers<[2], [2], [1], [1], [0, 0, 0, 1, 1, 1], [0], [0]>} : vector<4x8x8xf32>, vector<4x8x8xf32>, vector<4x8x8xf32> -> vector<4x8x8xf32>
    "tpu.trace_stop"() : () -> ()
    %cst_15 = arith.constant 0.353553385 : f32
    %18 = vector.broadcast %cst_15 : f32 to vector<4x8x8xf32>
    %19 = arith.mulf %17, %18 : vector<4x8x8xf32>
    %20 = vector.shape_cast %19 : vector<4x8x8xf32> to vector<4x1x8x8xf32>
    %21 = vector.shape_cast %3 : vector<2x8x8xf32> to vector<1x2x8x8xf32>
    %22 = vector.broadcast %20 : vector<4x1x8x8xf32> to vector<4x2x8x8xf32>
    %23 = vector.broadcast %21 : vector<1x2x8x8xf32> to vector<4x2x8x8xf32>
    %24 = arith.addf %22, %23 : vector<4x2x8x8xf32>
    %cst_16 = arith.constant dense<0xFF800000> : vector<4x2x8xf32>
    %25 = vector.multi_reduction <maximumf>, %24, %cst_16 [3] : vector<4x2x8x8xf32> to vector<4x2x8xf32>
    %26 = vector.shape_cast %25 : vector<4x2x8xf32> to vector<4x2x8x1xf32>
    %27 = vector.broadcast %26 : vector<4x2x8x1xf32> to vector<4x2x8x8xf32>
    %28 = arith.subf %24, %27 : vector<4x2x8x8xf32>
    %29 = math.exp %28 : vector<4x2x8x8xf32>
    %cst_17 = arith.constant dense<0.000000e+00> : vector<4x2x8xf32>
    %30 = vector.multi_reduction <add>, %29, %cst_17 [3] : vector<4x2x8x8xf32> to vector<4x2x8xf32>
    %31 = vector.shape_cast %30 : vector<4x2x8xf32> to vector<4x2x8x1xf32>
    %cst_18 = arith.constant 1.000000e+00 : f32
    %32 = vector.broadcast %cst_18 : f32 to vector<4x2x8x1xf32>
    %33 = arith.divf %32, %31 : vector<4x2x8x1xf32>
    %34 = vector.broadcast %33 : vector<4x2x8x1xf32> to vector<4x2x8x8xf32>
    %35 = arith.mulf %29, %34 : vector<4x2x8x8xf32>
    %cst_19 = arith.constant dense<0.000000e+00> : vector<4x8x8xf32>
    %36 = vector.multi_reduction <add>, %35, %cst_19 [1] : vector<4x2x8x8xf32> to vector<4x8x8xf32>
    "tpu.trace_start"() <{level = 10 : i32, message = "nqk,nkd->nqd"}> : () -> ()
    %cst_20 = arith.constant dense<0.000000e+00> : vector<4x8x8xf32>
    %37 = tpu.matmul %36, %16, %cst_20 {dimension_numbers = #tpu.dot_dimension_numbers<[2], [1], [1], [2], [0, 0, 0, 1, 1, 2], [0], [0]>} : vector<4x8x8xf32>, vector<4x8x8xf32>, vector<4x8x8xf32> -> vector<4x8x8xf32>
    "tpu.trace_stop"() : () -> ()
    %cst_21 = arith.constant 0.707106769 : f32
    %38 = vector.broadcast %cst_21 : f32 to vector<4x8x8xf32>
    %39 = arith.mulf %37, %38 : vector<4x8x8xf32>
    %c0_22 = arith.constant 0 : index
    %c0_23 = arith.constant 0 : index
    %c0_24 = arith.constant 0 : index
    %c0_25 = arith.constant 0 : index
    %40 = vector.load %arg5[%c0_22, %c0_23, %c0_24, %c0_25] : memref<2x4x8x32xf32, #tpu.memory_space<vmem>>, vector<1x4x8x32xf32>
    %41 = vector.shape_cast %40 : vector<1x4x8x32xf32> to vector<4x8x32xf32>
    "tpu.trace_start"() <{level = 10 : i32, message = "nqd,ndh->nqh"}> : () -> ()
    %cst_26 = arith.constant dense<0.000000e+00> : vector<4x8x32xf32>
    %42 = tpu.matmul %39, %41, %cst_26 {dimension_numbers = #tpu.dot_dimension_numbers<[2], [1], [1], [2], [0, 0, 0, 1, 1, 2], [0], [0]>} : vector<4x8x8xf32>, vector<4x8x32xf32>, vector<4x8x32xf32> -> vector<4x8x32xf32>
    "tpu.trace_stop"() : () -> ()
    %cst_27 = arith.constant dense<0.000000e+00> : vector<8x32xf32>
    %43 = vector.multi_reduction <add>, %42, %cst_27 [0] : vector<4x8x32xf32> to vector<8x32xf32>
    %c0_28 = arith.constant 0 : index
    %c0_29 = arith.constant 0 : index
    %c0_30 = arith.constant 0 : index
    %44 = vector.load %arg8[%c0_28, %c0_29, %c0_30] : memref<2x8x128xf32, #tpu.memory_space<vmem>>, vector<1x1x32xf32>
    %45 = vector.shape_cast %44 : vector<1x1x32xf32> to vector<1x32xf32>
    %46 = vector.broadcast %45 : vector<1x32xf32> to vector<8x32xf32>
    %47 = arith.addf %43, %46 : vector<8x32xf32>
    %48 = arith.addf %47, %1 : vector<8x32xf32>
    %c0_31 = arith.constant 0 : index
    %c1 = arith.constant 1 : index
    %c0_32 = arith.constant 0 : index
    %49 = vector.load %arg8[%c0_31, %c1, %c0_32] : memref<2x8x128xf32, #tpu.memory_space<vmem>>, vector<1x1x32xf32>
    %50 = vector.shape_cast %49 : vector<1x1x32xf32> to vector<1x32xf32>
    %c0_33 = arith.constant 0 : index
    %c2 = arith.constant 2 : index
    %c0_34 = arith.constant 0 : index
    %51 = vector.load %arg8[%c0_33, %c2, %c0_34] : memref<2x8x128xf32, #tpu.memory_space<vmem>>, vector<1x1x32xf32>
    %52 = vector.shape_cast %51 : vector<1x1x32xf32> to vector<1x32xf32>
    %cst_35 = arith.constant dense<0.000000e+00> : vector<8xf32>
    %53 = vector.multi_reduction <add>, %48, %cst_35 [1] : vector<8x32xf32> to vector<8xf32>
    %54 = vector.shape_cast %53 : vector<8xf32> to vector<8x1xf32>
    %cst_36 = arith.constant 3.200000e+01 : f32
    %55 = vector.broadcast %cst_36 : f32 to vector<8x1xf32>
    %56 = arith.divf %54, %55 : vector<8x1xf32>
    %57 = vector.broadcast %56 : vector<8x1xf32> to vector<8x32xf32>
    %58 = arith.subf %48, %57 : vector<8x32xf32>
    %59 = arith.mulf %58, %58 : vector<8x32xf32>
    %cst_37 = arith.constant dense<0.000000e+00> : vector<8xf32>
    %60 = vector.multi_reduction <add>, %59, %cst_37 [1] : vector<8x32xf32> to vector<8xf32>
    %61 = vector.shape_cast %60 : vector<8xf32> to vector<8x1xf32>
    %cst_38 = arith.constant 3.200000e+01 : f32
    %62 = vector.broadcast %cst_38 : f32 to vector<8x1xf32>
    %63 = arith.divf %61, %62 : vector<8x1xf32>
    %64 = vector.broadcast %56 : vector<8x1xf32> to vector<8x32xf32>
    %65 = arith.subf %48, %64 : vector<8x32xf32>
    %cst_39 = arith.constant 9.99999996E-13 : f32
    %66 = vector.broadcast %cst_39 : f32 to vector<8x1xf32>
    %67 = arith.addf %63, %66 : vector<8x1xf32>
    %68 = math.rsqrt %67 : vector<8x1xf32>
    %69 = vector.broadcast %68 : vector<8x1xf32> to vector<8x32xf32>
    %70 = arith.mulf %65, %69 : vector<8x32xf32>
    %71 = vector.broadcast %50 : vector<1x32xf32> to vector<8x32xf32>
    %72 = arith.mulf %70, %71 : vector<8x32xf32>
    %73 = vector.broadcast %52 : vector<1x32xf32> to vector<8x32xf32>
    %74 = arith.addf %72, %73 : vector<8x32xf32>
    %c0_40 = arith.constant 0 : index
    %c0_41 = arith.constant 0 : index
    %c0_42 = arith.constant 0 : index
    %75 = vector.load %arg6[%c0_40, %c0_41, %c0_42] : memref<2x32x64xf32, #tpu.memory_space<vmem>>, vector<1x32x64xf32>
    %76 = vector.shape_cast %75 : vector<1x32x64xf32> to vector<32x64xf32>
    %cst_43 = arith.constant dense<0.000000e+00> : vector<8x64xf32>
    %77 = tpu.matmul %74, %76, %cst_43 {dimension_numbers = #tpu.dot_dimension_numbers<[1], [0], [0], [1], [0, 0, 1, 1], [], []>} : vector<8x32xf32>, vector<32x64xf32>, vector<8x64xf32> -> vector<8x64xf32>
    %c0_44 = arith.constant 0 : index
    %c3 = arith.constant 3 : index
    %c0_45 = arith.constant 0 : index
    %78 = vector.load %arg8[%c0_44, %c3, %c0_45] : memref<2x8x128xf32, #tpu.memory_space<vmem>>, vector<1x1x64xf32>
    %79 = vector.shape_cast %78 : vector<1x1x64xf32> to vector<1x64xf32>
    %80 = vector.broadcast %79 : vector<1x64xf32> to vector<8x64xf32>
    %81 = arith.addf %77, %80 : vector<8x64xf32>
    %cst_46 = arith.constant 5.000000e-01 : f32
    %82 = vector.broadcast %cst_46 : f32 to vector<8x64xf32>
    %83 = arith.mulf %82, %81 : vector<8x64xf32>
    %cst_47 = arith.constant 0.707106769 : f32
    %84 = vector.broadcast %cst_47 : f32 to vector<8x64xf32>
    %85 = arith.mulf %81, %84 : vector<8x64xf32>
    %86 = math.absf %85 : vector<8x64xf32>
    %cst_48 = arith.constant 0.327591091 : f32
    %87 = vector.broadcast %cst_48 : f32 to vector<8x64xf32>
    %88 = arith.mulf %87, %86 : vector<8x64xf32>
    %cst_49 = arith.constant 1.000000e+00 : f32
    %89 = vector.broadcast %cst_49 : f32 to vector<8x64xf32>
    %90 = arith.addf %89, %88 : vector<8x64xf32>
    %cst_50 = arith.constant 1.000000e+00 : f32
    %91 = vector.broadcast %cst_50 : f32 to vector<8x64xf32>
    %92 = arith.divf %91, %90 : vector<8x64xf32>
    %cst_51 = arith.constant 1.06140542 : f32
    %93 = vector.broadcast %cst_51 : f32 to vector<8x64xf32>
    %94 = arith.mulf %93, %92 : vector<8x64xf32>
    %cst_52 = arith.constant -1.45315206 : f32
    %95 = vector.broadcast %cst_52 : f32 to vector<8x64xf32>
    %96 = arith.addf %94, %95 : vector<8x64xf32>
    %97 = arith.mulf %96, %92 : vector<8x64xf32>
    %cst_53 = arith.constant 1.42141378 : f32
    %98 = vector.broadcast %cst_53 : f32 to vector<8x64xf32>
    %99 = arith.addf %97, %98 : vector<8x64xf32>
    %100 = arith.mulf %99, %92 : vector<8x64xf32>
    %cst_54 = arith.constant -0.284496725 : f32
    %101 = vector.broadcast %cst_54 : f32 to vector<8x64xf32>
    %102 = arith.addf %100, %101 : vector<8x64xf32>
    %103 = arith.mulf %102, %92 : vector<8x64xf32>
    %cst_55 = arith.constant 0.254829586 : f32
    %104 = vector.broadcast %cst_55 : f32 to vector<8x64xf32>
    %105 = arith.addf %103, %104 : vector<8x64xf32>
    %106 = arith.mulf %105, %92 : vector<8x64xf32>
    %cst_56 = arith.constant 0.000000e+00 : f32
    %107 = vector.broadcast %cst_56 : f32 to vector<8x64xf32>
    %108 = arith.subf %107, %86 : vector<8x64xf32>
    %109 = arith.mulf %108, %86 : vector<8x64xf32>
    %110 = math.exp %109 : vector<8x64xf32>
    %111 = arith.mulf %106, %110 : vector<8x64xf32>
    %cst_57 = arith.constant 1.000000e+00 : f32
    %112 = vector.broadcast %cst_57 : f32 to vector<8x64xf32>
    %113 = arith.subf %112, %111 : vector<8x64xf32>
    %cst_58 = arith.constant 0.000000e+00 : f32
    %114 = vector.broadcast %cst_58 : f32 to vector<8x64xf32>
    %115 = arith.cmpf oge, %85, %114 : vector<8x64xf32>
    %cst_59 = arith.constant 0.000000e+00 : f32
    %116 = vector.broadcast %cst_59 : f32 to vector<8x64xf32>
    %117 = arith.subf %116, %113 : vector<8x64xf32>
    %118 = arith.select %115, %113, %117 : vector<8x64xi1>, vector<8x64xf32>
    %cst_60 = arith.constant 1.000000e+00 : f32
    %119 = vector.broadcast %cst_60 : f32 to vector<8x64xf32>
    %120 = arith.addf %119, %118 : vector<8x64xf32>
    %121 = arith.mulf %83, %120 : vector<8x64xf32>
    %c0_61 = arith.constant 0 : index
    %c0_62 = arith.constant 0 : index
    %c0_63 = arith.constant 0 : index
    %122 = vector.load %arg7[%c0_61, %c0_62, %c0_63] : memref<2x64x32xf32, #tpu.memory_space<vmem>>, vector<1x64x32xf32>
    %123 = vector.shape_cast %122 : vector<1x64x32xf32> to vector<64x32xf32>
    %cst_64 = arith.constant dense<0.000000e+00> : vector<8x32xf32>
    %124 = tpu.matmul %121, %123, %cst_64 {dimension_numbers = #tpu.dot_dimension_numbers<[1], [0], [0], [1], [0, 0, 1, 1], [], []>} : vector<8x64xf32>, vector<64x32xf32>, vector<8x32xf32> -> vector<8x32xf32>
    %c0_65 = arith.constant 0 : index
    %c4 = arith.constant 4 : index
    %c0_66 = arith.constant 0 : index
    %125 = vector.load %arg8[%c0_65, %c4, %c0_66] : memref<2x8x128xf32, #tpu.memory_space<vmem>>, vector<1x1x32xf32>
    %126 = vector.shape_cast %125 : vector<1x1x32xf32> to vector<1x32xf32>
    %127 = vector.broadcast %126 : vector<1x32xf32> to vector<8x32xf32>
    %128 = arith.addf %124, %127 : vector<8x32xf32>
    %129 = arith.addf %128, %74 : vector<8x32xf32>
    %c0_67 = arith.constant 0 : index
    %c5 = arith.constant 5 : index
    %c0_68 = arith.constant 0 : index
    %130 = vector.load %arg8[%c0_67, %c5, %c0_68] : memref<2x8x128xf32, #tpu.memory_space<vmem>>, vector<1x1x32xf32>
    %131 = vector.shape_cast %130 : vector<1x1x32xf32> to vector<1x32xf32>
    %c0_69 = arith.constant 0 : index
    %c6 = arith.constant 6 : index
    %c0_70 = arith.constant 0 : index
    %132 = vector.load %arg8[%c0_69, %c6, %c0_70] : memref<2x8x128xf32, #tpu.memory_space<vmem>>, vector<1x1x32xf32>
    %133 = vector.shape_cast %132 : vector<1x1x32xf32> to vector<1x32xf32>
    %cst_71 = arith.constant dense<0.000000e+00> : vector<8xf32>
    %134 = vector.multi_reduction <add>, %129, %cst_71 [1] : vector<8x32xf32> to vector<8xf32>
    %135 = vector.shape_cast %134 : vector<8xf32> to vector<8x1xf32>
    %cst_72 = arith.constant 3.200000e+01 : f32
    %136 = vector.broadcast %cst_72 : f32 to vector<8x1xf32>
    %137 = arith.divf %135, %136 : vector<8x1xf32>
    %138 = vector.broadcast %137 : vector<8x1xf32> to vector<8x32xf32>
    %139 = arith.subf %129, %138 : vector<8x32xf32>
    %140 = arith.mulf %139, %139 : vector<8x32xf32>
    %cst_73 = arith.constant dense<0.000000e+00> : vector<8xf32>
    %141 = vector.multi_reduction <add>, %140, %cst_73 [1] : vector<8x32xf32> to vector<8xf32>
    %142 = vector.shape_cast %141 : vector<8xf32> to vector<8x1xf32>
    %cst_74 = arith.constant 3.200000e+01 : f32
    %143 = vector.broadcast %cst_74 : f32 to vector<8x1xf32>
    %144 = arith.divf %142, %143 : vector<8x1xf32>
    %145 = vector.broadcast %137 : vector<8x1xf32> to vector<8x32xf32>
    %146 = arith.subf %129, %145 : vector<8x32xf32>
    %cst_75 = arith.constant 9.99999996E-13 : f32
    %147 = vector.broadcast %cst_75 : f32 to vector<8x1xf32>
    %148 = arith.addf %144, %147 : vector<8x1xf32>
    %149 = math.rsqrt %148 : vector<8x1xf32>
    %150 = vector.broadcast %149 : vector<8x1xf32> to vector<8x32xf32>
    %151 = arith.mulf %146, %150 : vector<8x32xf32>
    %152 = vector.broadcast %131 : vector<1x32xf32> to vector<8x32xf32>
    %153 = arith.mulf %151, %152 : vector<8x32xf32>
    %154 = vector.broadcast %133 : vector<1x32xf32> to vector<8x32xf32>
    %155 = arith.addf %153, %154 : vector<8x32xf32>
    %156 = vector.shape_cast %155 : vector<8x32xf32> to vector<1x8x32xf32>
    %157 = vector.shape_cast %156 : vector<1x8x32xf32> to vector<1x8x32xf32>
    %158 = vector.broadcast %157 : vector<1x8x32xf32> to vector<4x8x32xf32>
    %c1_76 = arith.constant 1 : index
    %c0_77 = arith.constant 0 : index
    %c0_78 = arith.constant 0 : index
    %c0_79 = arith.constant 0 : index
    %159 = vector.load %arg3[%c1_76, %c0_77, %c0_78, %c0_79] : memref<2x4x32x24xf32, #tpu.memory_space<vmem>>, vector<1x4x32x24xf32>
    %160 = vector.shape_cast %159 : vector<1x4x32x24xf32> to vector<4x32x24xf32>
    "tpu.trace_start"() <{level = 10 : i32, message = "nsh,nhd->nsd"}> : () -> ()
    %cst_80 = arith.constant dense<0.000000e+00> : vector<4x8x24xf32>
    %161 = tpu.matmul %158, %160, %cst_80 {dimension_numbers = #tpu.dot_dimension_numbers<[2], [1], [1], [2], [0, 0, 0, 1, 1, 2], [0], [0]>} : vector<4x8x32xf32>, vector<4x32x24xf32>, vector<4x8x24xf32> -> vector<4x8x24xf32>
    "tpu.trace_stop"() : () -> ()
    %c1_81 = arith.constant 1 : index
    %c0_82 = arith.constant 0 : index
    %c0_83 = arith.constant 0 : index
    %c0_84 = arith.constant 0 : index
    %162 = vector.load %arg4[%c1_81, %c0_82, %c0_83, %c0_84] : memref<2x4x1x24xf32, #tpu.memory_space<vmem>>, vector<1x4x1x24xf32>
    %163 = vector.shape_cast %162 : vector<1x4x1x24xf32> to vector<4x1x24xf32>
    %164 = vector.broadcast %163 : vector<4x1x24xf32> to vector<4x8x24xf32>
    %165 = arith.addf %161, %164 : vector<4x8x24xf32>
    %166 = vector.extract_strided_slice %165 {offsets = [0, 0, 0], sizes = [4, 8, 8], strides = [1, 1, 1]} : vector<4x8x24xf32> to vector<4x8x8xf32>
    %167 = vector.extract_strided_slice %165 {offsets = [0, 0, 8], sizes = [4, 8, 8], strides = [1, 1, 1]} : vector<4x8x24xf32> to vector<4x8x8xf32>
    %168 = vector.extract_strided_slice %165 {offsets = [0, 0, 16], sizes = [4, 8, 8], strides = [1, 1, 1]} : vector<4x8x24xf32> to vector<4x8x8xf32>
    "tpu.trace_start"() <{level = 10 : i32, message = "nqd,nkd->nqk"}> : () -> ()
    %cst_85 = arith.constant dense<0.000000e+00> : vector<4x8x8xf32>
    %169 = tpu.matmul %166, %167, %cst_85 {dimension_numbers = #tpu.dot_dimension_numbers<[2], [2], [1], [1], [0, 0, 0, 1, 1, 1], [0], [0]>} : vector<4x8x8xf32>, vector<4x8x8xf32>, vector<4x8x8xf32> -> vector<4x8x8xf32>
    "tpu.trace_stop"() : () -> ()
    %cst_86 = arith.constant 0.353553385 : f32
    %170 = vector.broadcast %cst_86 : f32 to vector<4x8x8xf32>
    %171 = arith.mulf %169, %170 : vector<4x8x8xf32>
    %172 = vector.shape_cast %171 : vector<4x8x8xf32> to vector<4x1x8x8xf32>
    %173 = vector.shape_cast %3 : vector<2x8x8xf32> to vector<1x2x8x8xf32>
    %174 = vector.broadcast %172 : vector<4x1x8x8xf32> to vector<4x2x8x8xf32>
    %175 = vector.broadcast %173 : vector<1x2x8x8xf32> to vector<4x2x8x8xf32>
    %176 = arith.addf %174, %175 : vector<4x2x8x8xf32>
    %cst_87 = arith.constant dense<0xFF800000> : vector<4x2x8xf32>
    %177 = vector.multi_reduction <maximumf>, %176, %cst_87 [3] : vector<4x2x8x8xf32> to vector<4x2x8xf32>
    %178 = vector.shape_cast %177 : vector<4x2x8xf32> to vector<4x2x8x1xf32>
    %179 = vector.broadcast %178 : vector<4x2x8x1xf32> to vector<4x2x8x8xf32>
    %180 = arith.subf %176, %179 : vector<4x2x8x8xf32>
    %181 = math.exp %180 : vector<4x2x8x8xf32>
    %cst_88 = arith.constant dense<0.000000e+00> : vector<4x2x8xf32>
    %182 = vector.multi_reduction <add>, %181, %cst_88 [3] : vector<4x2x8x8xf32> to vector<4x2x8xf32>
    %183 = vector.shape_cast %182 : vector<4x2x8xf32> to vector<4x2x8x1xf32>
    %cst_89 = arith.constant 1.000000e+00 : f32
    %184 = vector.broadcast %cst_89 : f32 to vector<4x2x8x1xf32>
    %185 = arith.divf %184, %183 : vector<4x2x8x1xf32>
    %186 = vector.broadcast %185 : vector<4x2x8x1xf32> to vector<4x2x8x8xf32>
    %187 = arith.mulf %181, %186 : vector<4x2x8x8xf32>
    %cst_90 = arith.constant dense<0.000000e+00> : vector<4x8x8xf32>
    %188 = vector.multi_reduction <add>, %187, %cst_90 [1] : vector<4x2x8x8xf32> to vector<4x8x8xf32>
    "tpu.trace_start"() <{level = 10 : i32, message = "nqk,nkd->nqd"}> : () -> ()
    %cst_91 = arith.constant dense<0.000000e+00> : vector<4x8x8xf32>
    %189 = tpu.matmul %188, %168, %cst_91 {dimension_numbers = #tpu.dot_dimension_numbers<[2], [1], [1], [2], [0, 0, 0, 1, 1, 2], [0], [0]>} : vector<4x8x8xf32>, vector<4x8x8xf32>, vector<4x8x8xf32> -> vector<4x8x8xf32>
    "tpu.trace_stop"() : () -> ()
    %cst_92 = arith.constant 0.707106769 : f32
    %190 = vector.broadcast %cst_92 : f32 to vector<4x8x8xf32>
    %191 = arith.mulf %189, %190 : vector<4x8x8xf32>
    %c1_93 = arith.constant 1 : index
    %c0_94 = arith.constant 0 : index
    %c0_95 = arith.constant 0 : index
    %c0_96 = arith.constant 0 : index
    %192 = vector.load %arg5[%c1_93, %c0_94, %c0_95, %c0_96] : memref<2x4x8x32xf32, #tpu.memory_space<vmem>>, vector<1x4x8x32xf32>
    %193 = vector.shape_cast %192 : vector<1x4x8x32xf32> to vector<4x8x32xf32>
    "tpu.trace_start"() <{level = 10 : i32, message = "nqd,ndh->nqh"}> : () -> ()
    %cst_97 = arith.constant dense<0.000000e+00> : vector<4x8x32xf32>
    %194 = tpu.matmul %191, %193, %cst_97 {dimension_numbers = #tpu.dot_dimension_numbers<[2], [1], [1], [2], [0, 0, 0, 1, 1, 2], [0], [0]>} : vector<4x8x8xf32>, vector<4x8x32xf32>, vector<4x8x32xf32> -> vector<4x8x32xf32>
    "tpu.trace_stop"() : () -> ()
    %cst_98 = arith.constant dense<0.000000e+00> : vector<8x32xf32>
    %195 = vector.multi_reduction <add>, %194, %cst_98 [0] : vector<4x8x32xf32> to vector<8x32xf32>
    %c1_99 = arith.constant 1 : index
    %c0_100 = arith.constant 0 : index
    %c0_101 = arith.constant 0 : index
    %196 = vector.load %arg8[%c1_99, %c0_100, %c0_101] : memref<2x8x128xf32, #tpu.memory_space<vmem>>, vector<1x1x32xf32>
    %197 = vector.shape_cast %196 : vector<1x1x32xf32> to vector<1x32xf32>
    %198 = vector.broadcast %197 : vector<1x32xf32> to vector<8x32xf32>
    %199 = arith.addf %195, %198 : vector<8x32xf32>
    %200 = arith.addf %199, %155 : vector<8x32xf32>
    %c1_102 = arith.constant 1 : index
    %c1_103 = arith.constant 1 : index
    %c0_104 = arith.constant 0 : index
    %201 = vector.load %arg8[%c1_102, %c1_103, %c0_104] : memref<2x8x128xf32, #tpu.memory_space<vmem>>, vector<1x1x32xf32>
    %202 = vector.shape_cast %201 : vector<1x1x32xf32> to vector<1x32xf32>
    %c1_105 = arith.constant 1 : index
    %c2_106 = arith.constant 2 : index
    %c0_107 = arith.constant 0 : index
    %203 = vector.load %arg8[%c1_105, %c2_106, %c0_107] : memref<2x8x128xf32, #tpu.memory_space<vmem>>, vector<1x1x32xf32>
    %204 = vector.shape_cast %203 : vector<1x1x32xf32> to vector<1x32xf32>
    %cst_108 = arith.constant dense<0.000000e+00> : vector<8xf32>
    %205 = vector.multi_reduction <add>, %200, %cst_108 [1] : vector<8x32xf32> to vector<8xf32>
    %206 = vector.shape_cast %205 : vector<8xf32> to vector<8x1xf32>
    %cst_109 = arith.constant 3.200000e+01 : f32
    %207 = vector.broadcast %cst_109 : f32 to vector<8x1xf32>
    %208 = arith.divf %206, %207 : vector<8x1xf32>
    %209 = vector.broadcast %208 : vector<8x1xf32> to vector<8x32xf32>
    %210 = arith.subf %200, %209 : vector<8x32xf32>
    %211 = arith.mulf %210, %210 : vector<8x32xf32>
    %cst_110 = arith.constant dense<0.000000e+00> : vector<8xf32>
    %212 = vector.multi_reduction <add>, %211, %cst_110 [1] : vector<8x32xf32> to vector<8xf32>
    %213 = vector.shape_cast %212 : vector<8xf32> to vector<8x1xf32>
    %cst_111 = arith.constant 3.200000e+01 : f32
    %214 = vector.broadcast %cst_111 : f32 to vector<8x1xf32>
    %215 = arith.divf %213, %214 : vector<8x1xf32>
    %216 = vector.broadcast %208 : vector<8x1xf32> to vector<8x32xf32>
    %217 = arith.subf %200, %216 : vector<8x32xf32>
    %cst_112 = arith.constant 9.99999996E-13 : f32
    %218 = vector.broadcast %cst_112 : f32 to vector<8x1xf32>
    %219 = arith.addf %215, %218 : vector<8x1xf32>
    %220 = math.rsqrt %219 : vector<8x1xf32>
    %221 = vector.broadcast %220 : vector<8x1xf32> to vector<8x32xf32>
    %222 = arith.mulf %217, %221 : vector<8x32xf32>
    %223 = vector.broadcast %202 : vector<1x32xf32> to vector<8x32xf32>
    %224 = arith.mulf %222, %223 : vector<8x32xf32>
    %225 = vector.broadcast %204 : vector<1x32xf32> to vector<8x32xf32>
    %226 = arith.addf %224, %225 : vector<8x32xf32>
    %c1_113 = arith.constant 1 : index
    %c0_114 = arith.constant 0 : index
    %c0_115 = arith.constant 0 : index
    %227 = vector.load %arg6[%c1_113, %c0_114, %c0_115] : memref<2x32x64xf32, #tpu.memory_space<vmem>>, vector<1x32x64xf32>
    %228 = vector.shape_cast %227 : vector<1x32x64xf32> to vector<32x64xf32>
    %cst_116 = arith.constant dense<0.000000e+00> : vector<8x64xf32>
    %229 = tpu.matmul %226, %228, %cst_116 {dimension_numbers = #tpu.dot_dimension_numbers<[1], [0], [0], [1], [0, 0, 1, 1], [], []>} : vector<8x32xf32>, vector<32x64xf32>, vector<8x64xf32> -> vector<8x64xf32>
    %c1_117 = arith.constant 1 : index
    %c3_118 = arith.constant 3 : index
    %c0_119 = arith.constant 0 : index
    %230 = vector.load %arg8[%c1_117, %c3_118, %c0_119] : memref<2x8x128xf32, #tpu.memory_space<vmem>>, vector<1x1x64xf32>
    %231 = vector.shape_cast %230 : vector<1x1x64xf32> to vector<1x64xf32>
    %232 = vector.broadcast %231 : vector<1x64xf32> to vector<8x64xf32>
    %233 = arith.addf %229, %232 : vector<8x64xf32>
    %cst_120 = arith.constant 5.000000e-01 : f32
    %234 = vector.broadcast %cst_120 : f32 to vector<8x64xf32>
    %235 = arith.mulf %234, %233 : vector<8x64xf32>
    %cst_121 = arith.constant 0.707106769 : f32
    %236 = vector.broadcast %cst_121 : f32 to vector<8x64xf32>
    %237 = arith.mulf %233, %236 : vector<8x64xf32>
    %238 = math.absf %237 : vector<8x64xf32>
    %cst_122 = arith.constant 0.327591091 : f32
    %239 = vector.broadcast %cst_122 : f32 to vector<8x64xf32>
    %240 = arith.mulf %239, %238 : vector<8x64xf32>
    %cst_123 = arith.constant 1.000000e+00 : f32
    %241 = vector.broadcast %cst_123 : f32 to vector<8x64xf32>
    %242 = arith.addf %241, %240 : vector<8x64xf32>
    %cst_124 = arith.constant 1.000000e+00 : f32
    %243 = vector.broadcast %cst_124 : f32 to vector<8x64xf32>
    %244 = arith.divf %243, %242 : vector<8x64xf32>
    %cst_125 = arith.constant 1.06140542 : f32
    %245 = vector.broadcast %cst_125 : f32 to vector<8x64xf32>
    %246 = arith.mulf %245, %244 : vector<8x64xf32>
    %cst_126 = arith.constant -1.45315206 : f32
    %247 = vector.broadcast %cst_126 : f32 to vector<8x64xf32>
    %248 = arith.addf %246, %247 : vector<8x64xf32>
    %249 = arith.mulf %248, %244 : vector<8x64xf32>
    %cst_127 = arith.constant 1.42141378 : f32
    %250 = vector.broadcast %cst_127 : f32 to vector<8x64xf32>
    %251 = arith.addf %249, %250 : vector<8x64xf32>
    %252 = arith.mulf %251, %244 : vector<8x64xf32>
    %cst_128 = arith.constant -0.284496725 : f32
    %253 = vector.broadcast %cst_128 : f32 to vector<8x64xf32>
    %254 = arith.addf %252, %253 : vector<8x64xf32>
    %255 = arith.mulf %254, %244 : vector<8x64xf32>
    %cst_129 = arith.constant 0.254829586 : f32
    %256 = vector.broadcast %cst_129 : f32 to vector<8x64xf32>
    %257 = arith.addf %255, %256 : vector<8x64xf32>
    %258 = arith.mulf %257, %244 : vector<8x64xf32>
    %cst_130 = arith.constant 0.000000e+00 : f32
    %259 = vector.broadcast %cst_130 : f32 to vector<8x64xf32>
    %260 = arith.subf %259, %238 : vector<8x64xf32>
    %261 = arith.mulf %260, %238 : vector<8x64xf32>
    %262 = math.exp %261 : vector<8x64xf32>
    %263 = arith.mulf %258, %262 : vector<8x64xf32>
    %cst_131 = arith.constant 1.000000e+00 : f32
    %264 = vector.broadcast %cst_131 : f32 to vector<8x64xf32>
    %265 = arith.subf %264, %263 : vector<8x64xf32>
    %cst_132 = arith.constant 0.000000e+00 : f32
    %266 = vector.broadcast %cst_132 : f32 to vector<8x64xf32>
    %267 = arith.cmpf oge, %237, %266 : vector<8x64xf32>
    %cst_133 = arith.constant 0.000000e+00 : f32
    %268 = vector.broadcast %cst_133 : f32 to vector<8x64xf32>
    %269 = arith.subf %268, %265 : vector<8x64xf32>
    %270 = arith.select %267, %265, %269 : vector<8x64xi1>, vector<8x64xf32>
    %cst_134 = arith.constant 1.000000e+00 : f32
    %271 = vector.broadcast %cst_134 : f32 to vector<8x64xf32>
    %272 = arith.addf %271, %270 : vector<8x64xf32>
    %273 = arith.mulf %235, %272 : vector<8x64xf32>
    %c1_135 = arith.constant 1 : index
    %c0_136 = arith.constant 0 : index
    %c0_137 = arith.constant 0 : index
    %274 = vector.load %arg7[%c1_135, %c0_136, %c0_137] : memref<2x64x32xf32, #tpu.memory_space<vmem>>, vector<1x64x32xf32>
    %275 = vector.shape_cast %274 : vector<1x64x32xf32> to vector<64x32xf32>
    %cst_138 = arith.constant dense<0.000000e+00> : vector<8x32xf32>
    %276 = tpu.matmul %273, %275, %cst_138 {dimension_numbers = #tpu.dot_dimension_numbers<[1], [0], [0], [1], [0, 0, 1, 1], [], []>} : vector<8x64xf32>, vector<64x32xf32>, vector<8x32xf32> -> vector<8x32xf32>
    %c1_139 = arith.constant 1 : index
    %c4_140 = arith.constant 4 : index
    %c0_141 = arith.constant 0 : index
    %277 = vector.load %arg8[%c1_139, %c4_140, %c0_141] : memref<2x8x128xf32, #tpu.memory_space<vmem>>, vector<1x1x32xf32>
    %278 = vector.shape_cast %277 : vector<1x1x32xf32> to vector<1x32xf32>
    %279 = vector.broadcast %278 : vector<1x32xf32> to vector<8x32xf32>
    %280 = arith.addf %276, %279 : vector<8x32xf32>
    %281 = arith.addf %280, %226 : vector<8x32xf32>
    %c1_142 = arith.constant 1 : index
    %c5_143 = arith.constant 5 : index
    %c0_144 = arith.constant 0 : index
    %282 = vector.load %arg8[%c1_142, %c5_143, %c0_144] : memref<2x8x128xf32, #tpu.memory_space<vmem>>, vector<1x1x32xf32>
    %283 = vector.shape_cast %282 : vector<1x1x32xf32> to vector<1x32xf32>
    %c1_145 = arith.constant 1 : index
    %c6_146 = arith.constant 6 : index
    %c0_147 = arith.constant 0 : index
    %284 = vector.load %arg8[%c1_145, %c6_146, %c0_147] : memref<2x8x128xf32, #tpu.memory_space<vmem>>, vector<1x1x32xf32>
    %285 = vector.shape_cast %284 : vector<1x1x32xf32> to vector<1x32xf32>
    %cst_148 = arith.constant dense<0.000000e+00> : vector<8xf32>
    %286 = vector.multi_reduction <add>, %281, %cst_148 [1] : vector<8x32xf32> to vector<8xf32>
    %287 = vector.shape_cast %286 : vector<8xf32> to vector<8x1xf32>
    %cst_149 = arith.constant 3.200000e+01 : f32
    %288 = vector.broadcast %cst_149 : f32 to vector<8x1xf32>
    %289 = arith.divf %287, %288 : vector<8x1xf32>
    %290 = vector.broadcast %289 : vector<8x1xf32> to vector<8x32xf32>
    %291 = arith.subf %281, %290 : vector<8x32xf32>
    %292 = arith.mulf %291, %291 : vector<8x32xf32>
    %cst_150 = arith.constant dense<0.000000e+00> : vector<8xf32>
    %293 = vector.multi_reduction <add>, %292, %cst_150 [1] : vector<8x32xf32> to vector<8xf32>
    %294 = vector.shape_cast %293 : vector<8xf32> to vector<8x1xf32>
    %cst_151 = arith.constant 3.200000e+01 : f32
    %295 = vector.broadcast %cst_151 : f32 to vector<8x1xf32>
    %296 = arith.divf %294, %295 : vector<8x1xf32>
    %297 = vector.broadcast %289 : vector<8x1xf32> to vector<8x32xf32>
    %298 = arith.subf %281, %297 : vector<8x32xf32>
    %cst_152 = arith.constant 9.99999996E-13 : f32
    %299 = vector.broadcast %cst_152 : f32 to vector<8x1xf32>
    %300 = arith.addf %296, %299 : vector<8x1xf32>
    %301 = math.rsqrt %300 : vector<8x1xf32>
    %302 = vector.broadcast %301 : vector<8x1xf32> to vector<8x32xf32>
    %303 = arith.mulf %298, %302 : vector<8x32xf32>
    %304 = vector.broadcast %283 : vector<1x32xf32> to vector<8x32xf32>
    %305 = arith.mulf %303, %304 : vector<8x32xf32>
    %306 = vector.broadcast %285 : vector<1x32xf32> to vector<8x32xf32>
    %307 = arith.addf %305, %306 : vector<8x32xf32>
    %c0_153 = arith.constant 0 : index
    %c0_154 = arith.constant 0 : index
    %c0_155 = arith.constant 0 : index
    %308 = vector.load %arg9[%c0_153, %c0_154, %c0_155] : memref<1x8x32xf32, #tpu.memory_space<vmem>>, vector<1x8x32xf32>
    %309 = vector.shape_cast %308 : vector<1x8x32xf32> to vector<8x32xf32>
    %310 = vector.shape_cast %307 : vector<8x32xf32> to vector<1x8x32xf32>
    tpu.vector_store %arg9[%c0_153, %c0_154, %c0_155], %310 {strides = array<i32>} : memref<1x8x32xf32, #tpu.memory_space<vmem>>, vector<1x8x32xf32>,
    return
  }
  func.func @transform_0(%arg0: i32) -> (i32, i32, i32) {
    %c0_i32 = arith.constant 0 : i32
    %c0_i32_0 = arith.constant 0 : i32
    %c0_i32_1 = arith.constant 0 : i32
    return %arg0, %c0_i32, %c0_i32_0 : i32, i32, i32
  }
  func.func @transform_1(%arg0: i32) -> (i32, i32, i32, i32) {
    %c0_i32 = arith.constant 0 : i32
    %c0_i32_0 = arith.constant 0 : i32
    %c0_i32_1 = arith.constant 0 : i32
    %c0_i32_2 = arith.constant 0 : i32
    return %arg0, %c0_i32, %c0_i32_0, %c0_i32_1 : i32, i32, i32, i32
  }
  func.func @transform_2(%arg0: i32) -> (i32, i32, i32, i32) {
    %c0_i32 = arith.constant 0 : i32
    %c0_i32_0 = arith.constant 0 : i32
    %c0_i32_1 = arith.constant 0 : i32
    %c0_i32_2 = arith.constant 0 : i32
    %c0_i32_3 = arith.constant 0 : i32
    return %c0_i32, %c0_i32_0, %c0_i32_1, %c0_i32_2 : i32, i32, i32, i32
  }
  func.func @transform_3(%arg0: i32) -> (i32, i32, i32, i32) {
    %c0_i32 = arith.constant 0 : i32
    %c0_i32_0 = arith.constant 0 : i32
    %c0_i32_1 = arith.constant 0 : i32
    %c0_i32_2 = arith.constant 0 : i32
    %c0_i32_3 = arith.constant 0 : i32
    return %c0_i32, %c0_i32_0, %c0_i32_1, %c0_i32_2 : i32, i32, i32, i32
  }
  func.func @transform_4(%arg0: i32) -> (i32, i32, i32, i32) {
    %c0_i32 = arith.constant 0 : i32
    %c0_i32_0 = arith.constant 0 : i32
    %c0_i32_1 = arith.constant 0 : i32
    %c0_i32_2 = arith.constant 0 : i32
    %c0_i32_3 = arith.constant 0 : i32
    return %c0_i32, %c0_i32_0, %c0_i32_1, %c0_i32_2 : i32, i32, i32, i32
  }
  func.func @transform_5(%arg0: i32) -> (i32, i32, i32) {
    %c0_i32 = arith.constant 0 : i32
    %c0_i32_0 = arith.constant 0 : i32
    %c0_i32_1 = arith.constant 0 : i32
    %c0_i32_2 = arith.constant 0 : i32
    return %c0_i32, %c0_i32_0, %c0_i32_1 : i32, i32, i32
  }
  func.func @transform_6(%arg0: i32) -> (i32, i32, i32) {
    %c0_i32 = arith.constant 0 : i32
    %c0_i32_0 = arith.constant 0 : i32
    %c0_i32_1 = arith.constant 0 : i32
    %c0_i32_2 = arith.constant 0 : i32
    return %c0_i32, %c0_i32_0, %c0_i32_1 : i32, i32, i32
  }
  func.func @transform_7(%arg0: i32) -> (i32, i32, i32) {
    %c0_i32 = arith.constant 0 : i32
    %c0_i32_0 = arith.constant 0 : i32
    %c0_i32_1 = arith.constant 0 : i32
    %c0_i32_2 = arith.constant 0 : i32
    return %c0_i32, %c0_i32_0, %c0_i32_1 : i32, i32, i32
  }
  func.func @transform_8(%arg0: i32) -> (i32, i32, i32) {
    %c0_i32 = arith.constant 0 : i32
    %c0_i32_0 = arith.constant 0 : i32
    %c0_i32_1 = arith.constant 0 : i32
    return %arg0, %c0_i32, %c0_i32_0 : i32, i32, i32
  }
}

</mosaic_0001>

<bundles_post_ra>
// kernel: tpu_custom_call.1
= control target key start
LH: loop header
LB: loop body
LE: loop exit
PB: predicated region body
PF: predicated region fallthrough
CT: control target
= control target key end

     0   :  { %13 = vsyncpa [#allocation3], 0  ;;  %s3322_s0 = inlined_call_operand.vmem [shape: f32[2,8,32], index: 0, kind: input, shape index: {}]   ;;  %s3323_s1 = inlined_call_operand.vmem [shape: f32[2,2,8,8], index: 1, kind: input, shape index: {}]   ;;  %s3324_s2 = inlined_call_operand.vmem [shape: f32[2,4,32,24], index: 2, kind: input, shape index: {}]   ;;  %s3325_s3 = inlined_call_operand.vmem [shape: f32[2,4,1,24], index: 3, kind: input, shape index: {}]   ;;  %s3326_s4 = inlined_call_operand.vmem [shape: f32[2,4,8,32], index: 4, kind: input, shape index: {}]   ;;  %s3327_s5 = inlined_call_operand.vmem [shape: f32[2,32,64], index: 5, kind: input, shape index: {}]   ;;  %s3328_s6 = inlined_call_operand.vmem [shape: f32[2,64,32], index: 6, kind: input, shape index: {}]   ;;  %s3329_s7 = inlined_call_operand.vmem [shape: f32[2,8,128], index: 7, kind: input, shape index: {}]   ;;  %s3330_s8 = inlined_call_operand.hbm [shape: f32[2,8,32], index: 8, kind: output, shape index: {}]  }
   0x1   :  { %15 = vsyncpa [#allocation3 + $0x1], 0  ;;  %s2444_s27 = smov 0   ;;  %s2446_s28 = smov 0  }
   0x2   :  { %s2448_s29 = smov 0   ;;  %s2450_s30 = smov 0  }
   0x3 LB: > { %s2465_s9 = sadd.s32 4294967295, %s2394_s30   ;;  %s2070_s10 = sadd.s32 4294967294, %s2394_s30   ;;  %s2394_s30 = sphi %s2450_s30, %s3360_s30   ;;  %s2390_s29 = sphi %s2448_s29, %s3359_s29   ;;  %s2386_s28 = sphi %s2446_s28, %s3358_s28   ;;  %s2382_s27 = sphi %s2444_s27, %s3357_s27  }
   0x4   : > { %s2469_s11 = sadd.s32 1, %s2394_s30   ;;  %s206_s12 = sadd.s32 1, %s2390_s29 }
   0x5   : > { %s203_s13 = ssub.s32 %s2394_s30, %s2469_s11  ;;  %p216_p0 = scmp.ne.s32.totalorder %s2390_s29, %s2386_s28 }
   0x6   : > { %p204_p1 = scmp.eq.s32.totalorder %s203_s13, 0  ;;  %p217_p2 = scmp.eq.s32.totalorder %s2465_s9, 1 }
   0x7   : > { %p222_p3 = scmp.ne.s32.totalorder %s2386_s28, %s2382_s27  ;;  %p223_p4 = scmp.eq.s32.totalorder %s2070_s10, 1 }
   0x8   : > { %s2480_s14 = scalar_select %p204_p1, %s2390_s29, %s206_s12  }
   0x9   : > { %p2482_p5 = por %p217_p2, %p216_p0  ;;  %p2486_p6 = por %p223_p4, %p222_p3 }
   0xa   : > { %p2073_p7 = scmp.ge.s32.totalorder %s2394_s30, 1  ;;  %p274_p8 = scmp.lt.s32.totalorder %s2394_s30, 3 }
   0xc   : > { %p275_p9 = pnand %p2073_p7, %p274_p8 }
   0xd   : > { %p312_p10 = scmp.lt.s32.totalorder (!%p275_p9), %s2465_s9, 1  ;;  %s2396_s18 = smov (!%p275_p9), 120  }
   0xe   : > { %278 = sbr.rel (%p275_p9) target bundleno = 3684 (0xe64), region = 52  ;;  %s309_s25 = sand.u32 (!%p275_p9), 1, %s2386_s28  }
  0x13   : > { %v327_v0 = vld [vmem:[%s3324_s2 + $0x18] sm:$0xff]  ;;  %v326_v3 = vld [vmem:[%s3324_s2 + $0x10] sm:$0xff]  ;;  %v325_v6 = vld [vmem:[%s3324_s2 + $0x8] sm:$0xff]  ;;  %s2518_s20 = scalar_select %p312_p10, %s2465_s9, 1  ;;  %vm356_vm0 = vcmask 261120   ;;  %vm443_vm1 = vcmask 64512  }
  0x14   : > { %v335_v1 = vld [vmem:[%s3324_s2 + $0x58] sm:$0xff]  ;;  %372 = vmatpush.msra.mxu1 %v327_v0  ;;  %v334_v4 = vld [vmem:[%s3324_s2 + $0x50] sm:$0xff]  ;;  %v333_v7 = vld [vmem:[%s3324_s2 + $0x48] sm:$0xff] }
  0x15   : > { %v339_v2 = vld [vmem:[%s3324_s2 + $0x78] sm:$0xff]  ;;  %412 = vmatpush.msra.mxu2 %v335_v1  ;;  %v338_v5 = vld [vmem:[%s3324_s2 + $0x70] sm:$0xff]  ;;  %v337_v8 = vld [vmem:[%s3324_s2 + $0x68] sm:$0xff]  ;;  %s2075_s10 = sshll.u32 %s2518_s20, 3  ;;  %s2169_s26 = sshll.u32 %s2518_s20, 4 }
  0x16   : > { %432 = vmatpush.msra.mxu3 %v339_v2  ;;  %373 = vmatpush.msra.mxu1 %v326_v3  ;;  %v324_v9 = vld [vmem:[%s3324_s2] sm:$0xff]  ;;  %s315_s19 = scalar_lea.vmem %s3322_s0, %s2075_s10  ;;  %v331_v13 = vld [vmem:[%s3324_s2 + $0x38] sm:$0xff]  ;;  %v330_v14 = vld [vmem:[%s3324_s2 + $0x30] sm:$0xff]  ;;  %s2602_s13 = scalar_lea.vmem %s3323_s1, %s2169_s26 }
  0x17   : > { %413 = vmatpush.msra.mxu2 %v334_v4  ;;  %v332_v10 = vld [vmem:[%s3324_s2 + $0x40] sm:$0xff]  ;;  %v329_v15 = vld [vmem:[%s3324_s2 + $0x28] sm:$0xff]  ;;  %s2397_s20 = smov 112   ;;  %s2074_s26 = sshll.u32 %s309_s25, 3 }
  0x18   : > { %433 = vmatpush.msra.mxu3 %v338_v5  ;;  %374 = vmatpush.msra.mxu1 %v325_v6  ;;  %v336_v11 = vld [vmem:[%s3324_s2 + $0x60] sm:$0xff]  ;;  %v2610_v38 = vld [vmem:[%s2602_s13 + $0x8] sm:$0xff]  ;;  %s2166_s10 = sshll.u32 %s2465_s9, 3 }
  0x19   : > { %414 = vmatpush.msra.mxu2 %v333_v7  ;;  %v2536_v12 = vld [vmem:[%s315_s19] sm:$0xff]  ;;  %s1994_s22 = scalar_lea.hbm %s3330_s8, %s2166_s10 }
  0x1a   : > { %434 = vmatpush.msra.mxu3 %v337_v8  ;;  %375 = vmatpush.msra.mxu1 %v324_v9  ;;  %v328_v16 = vld [vmem:[%s3324_s2 + $0x20] sm:$0xff] }
  0x1b   : > { %415 = vmatpush.msra.mxu2 %v332_v10  ;;  %2078 = vmatmul.msk.f32.vlgmr.msra.gmra.mxu1 %vm356_vm0, %v2536_v12  ;;  %v2227_v17 = vld [vmem:[%s3325_s3] ss:$0 sm:$0xff]  ;;  %v2228_v20 = vld [vmem:[%s3325_s3 + $0x2] ss:$0 sm:$0xff]  ;;  %v2230_v21 = vld [vmem:[%s3325_s3 + $0x1] ss:$0 sm:$0xff] }
  0x1c   : > { %435 = vmatpush.msra.mxu3 %v336_v11  ;;  %2080 = vmatmul.msk.f32.vlgmr.msra.gmra.mxu2 %vm356_vm0, %v2536_v12  ;;  %v2229_v26 = vld [vmem:[%s3325_s3 + $0x3] ss:$0 sm:$0xff] }
  0x1d   : > { %2081 = vmatmul.msk.f32.vlgmr.msra.gmra.mxu3 %vm356_vm0, %v2536_v12  ;;  %392 = vmatpush.msrb.mxu1 %v331_v13  ;;  %v2605_v35 = vld [vmem:[%s2602_s13] sm:$0xff] }
  0x1f   : > { %393 = vmatpush.msrb.mxu1 %v330_v14 }
  0x21   : > { %394 = vmatpush.msrb.mxu1 %v329_v15 }
  0x23   : > { %395 = vmatpush.msrb.mxu1 %v328_v16 }
  0x24   : > { %2079 = vmatmul.msk.f32.vlgmr.msrb.gmra.mxu1 %vm356_vm0, %v2536_v12 }
  0x98   : > { %v377_v18 = vpop.f32.mrf.mxu1 }
  0x99   : > { %v2561_v19 = vadd.f32 %v2227_v17, %v377_v18 }
  0x9b   : > { %441 = vrot.lane.b32.xlu1 %v2561_v19, %s2396_s18 }
  0x9f   : > { %v417_v22 = vpop.f32.mrf.mxu2 }
  0xa0   : > { %v2571_v23 = vadd.f32 %v2228_v20, %v417_v22  ;;  %v437_v27 = vpop.f32.mrf.mxu3 }
  0xa1   : > { %v397_v24 = vpop.f32.mrf.mxu1  ;;  %v2582_v28 = vadd.f32 %v2229_v26, %v437_v27 }
  0xa2   : > { %v2573_v25 = vadd.f32 %v2230_v21, %v397_v24  ;;  %496 = vrot.lane.b32.xlu0 %v2571_v23, %s2396_s18 }
  0xa4   : > { %469 = vrot.lane.b32.xlu1 %v2573_v25, %s2396_s18 }
  0xaa   : > { %523 = vrot.lane.b32.xlu0 %v2582_v28, %s2396_s18 }
 0x10d   : > { %v442_v29 = vpop.permute.xlu1 %441 }
 0x10e   : > { %2082 = vmatpush.xpose.msk.msra.mxu0 %vm443_vm1, %v442_v29 }
 0x111   : > { %2083 = vmatmul.msk.f32.vlgmr.msra.gmra.mxu0 %vm443_vm1, %v2561_v19 }
 0x114   : > { %v497_v30 = vpop.permute.xlu0 %496 }
 0x115   : > { %2086 = vmatpush.xpose.msk.msrb.mxu2 %vm443_vm1, %v497_v30 }
 0x116   : > { %v470_v31 = vpop.permute.xlu1 %469 }
 0x117   : > { %2084 = vmatpush.xpose.msk.msra.mxu1 %vm443_vm1, %v470_v31 }
 0x118   : > { %2087 = vmatmul.msk.f32.vlgmr.msrb.gmra.mxu2 %vm443_vm1, %v2571_v23 }
 0x11a   : > { %2085 = vmatmul.msk.f32.vlgmr.msra.gmra.mxu1 %vm443_vm1, %v2573_v25 }
 0x11c   : > { %v524_v32 = vpop.permute.xlu0 %523 }
 0x11d   : > { %2088 = vmatpush.xpose.msk.msrb.mxu3 %vm443_vm1, %v524_v32 }
 0x120   : > { %2089 = vmatmul.msk.f32.vlgmr.msrb.gmra.mxu3 %vm443_vm1, %v2582_v28 }
 0x18e   : > { %v465_v42 = vpop.f32.mrf.mxu0 }
 0x18f   : > { %v549_v45 = vmul.f32 0.35355338, %v465_v42  ;;  %v2212_v42 = vpack.i.bf16 %v2582_v28, %v2571_v23 }
 0x191   : > { %v553_v49 = vadd.f32 %v549_v45, %v2605_v35  ;;  %v554_v51 = vadd.f32 %v549_v45, %v2610_v38 }
 0x193   : > { %v561_v50 = vsel %vm443_vm1, %v553_v49, -inf  ;;  %v564_v54 = vsel %vm443_vm1, %v554_v51, -inf }
 0x197   : > { %v492_v52 = vpop.f32.mrf.mxu1 }
 0x198   : > { %v550_v53 = vmul.f32 0.35355338, %v492_v52 }
 0x19a   : > { %v555_v55 = vadd.f32 %v550_v53, %v2605_v35  ;;  %v556_v57 = vadd.f32 %v550_v53, %v2610_v38 }
 0x19b   : > { %v519_v33 = vpop.f32.mrf.mxu2 }
 0x19c   : > { %v551_v34 = vmul.f32 0.35355338, %v519_v33  ;;  %v567_v56 = vsel %vm443_vm1, %v555_v55, -inf  ;;  %v570_v58 = vsel %vm443_vm1, %v556_v57, -inf }
 0x19e   : > { %v557_v36 = vadd.f32 %v551_v34, %v2605_v35  ;;  %v558_v41 = vadd.f32 %v551_v34, %v2610_v38 }
 0x1a0   : > { %v573_v37 = vsel %vm443_vm1, %v557_v36, -inf  ;;  %v576_v46 = vsel %vm443_vm1, %v558_v41, -inf }
 0x1a1   : > { %574 = vmax.xlane.f32.xlu2 %v573_v37 }
 0x1a3   : > { %v546_v39 = vpop.f32.mrf.mxu3 }
 0x1a4   : > { %v552_v40 = vmul.f32 0.35355338, %v546_v39 }
 0x1a6   : > { %v559_v43 = vadd.f32 %v552_v40, %v2605_v35  ;;  %v560_v44 = vadd.f32 %v552_v40, %v2610_v38 }
 0x1a8   : > { %v579_v47 = vsel %vm443_vm1, %v559_v43, -inf  ;;  %v582_v48 = vsel %vm443_vm1, %v560_v44, -inf }
 0x1a9   : > { %577 = vmax.xlane.f32.xlu2 %v576_v46  ;;  %580 = vmax.xlane.f32.xlu0 %v579_v47 }
 0x1aa   : > { %583 = vmax.xlane.f32.xlu1 %v582_v48 }
 0x1b1   : > { %562 = vmax.xlane.f32.xlu2 %v561_v50 }
 0x1b9   : > { %565 = vmax.xlane.f32.xlu2 %v564_v54 }
 0x1c1   : > { %568 = vmax.xlane.f32.xlu2 %v567_v56 }
 0x1c9   : > { %571 = vmax.xlane.f32.xlu2 %v570_v58 }
 0x214   : > { %v575_v59 = vpop.xlane.xlu2 %574 }
 0x215   : > { %v589_v60 = vsub.f32 %v557_v36, %v575_v59 }
 0x217   : > { %v601_v61 = vmul.f32 1.442695, %v589_v60 }
 0x219   : > { %2249 = vpow2.f32 %v601_v61 }
 0x21c   : > { %v578_v62 = vpop.xlane.xlu2 %577  ;;  %v581_v8 = vpop.xlane.xlu0 %580 }
 0x21d   : > { %v590_v63 = vsub.f32 %v558_v41, %v578_v62  ;;  %v591_v13 = vsub.f32 %v559_v43, %v581_v8  ;;  %v584_v17 = vpop.xlane.xlu1 %583  ;;  %v2217_v43 = vpack.i.bf16 %v2573_v25, %v2561_v19 }
 0x21e   : > { %v592_v22 = vsub.f32 %v560_v44, %v584_v17 }
 0x21f   : > { %v2626_v0 = vpop.eup %2249  ;;  %v603_v1 = vmul.f32 1.442695, %v590_v63  ;;  %v605_v16 = vmul.f32 1.442695, %v591_v13 }
 0x220   : > { %v621_v2 = vsel %vm443_vm1, %v2626_v0, 0.0  ;;  %v607_v27 = vmul.f32 1.442695, %v592_v22 }
 0x221   : > { %2251 = vpow2.f32 %v603_v1  ;;  %622 = vadd.xlane.f32.xlu2 %v621_v2 }
 0x224   : > { %v563_v3 = vpop.xlane.xlu2 %562 }
 0x225   : > { %v585_v4 = vsub.f32 %v553_v49, %v563_v3 }
 0x227   : > { %v2630_v5 = vpop.eup %2251  ;;  %v593_v6 = vmul.f32 1.442695, %v585_v4 }
 0x228   : > { %v624_v7 = vsel %vm443_vm1, %v2630_v5, 0.0 }
 0x229   : > { %2253 = vpow2.f32 %v593_v6  ;;  %625 = vadd.xlane.f32.xlu2 %v624_v7 }
 0x22c   : > { %v566_v9 = vpop.xlane.xlu2 %565 }
 0x22d   : > { %v586_v10 = vsub.f32 %v554_v51, %v566_v9 }
 0x22f   : > { %v2634_v11 = vpop.eup %2253  ;;  %v595_v14 = vmul.f32 1.442695, %v586_v10 }
 0x230   : > { %v609_v15 = vsel %vm443_vm1, %v2634_v11, 0.0 }
 0x231   : > { %2255 = vpow2.f32 %v595_v14  ;;  %610 = vadd.xlane.f32.xlu2 %v609_v15 }
 0x232   : > { %2257 = vpow2.f32 %v605_v16 }
 0x234   : > { %v569_v18 = vpop.xlane.xlu2 %568 }
 0x235   : > { %v587_v20 = vsub.f32 %v555_v55, %v569_v18 }
 0x237   : > { %v2638_v21 = vpop.eup %2255  ;;  %v597_v24 = vmul.f32 1.442695, %v587_v20 }
 0x238   : > { %v612_v26 = vsel %vm443_vm1, %v2638_v21, 0.0  ;;  %v2642_v30 = vpop.eup %2257 }
 0x239   : > { %2259 = vpow2.f32 %v597_v24  ;;  %613 = vadd.xlane.f32.xlu0 %v612_v26  ;;  %v627_v34 = vsel %vm443_vm1, %v2642_v30, 0.0 }
 0x23a   : > { %2261 = vpow2.f32 %v607_v27 }
 0x23c   : > { %v572_v29 = vpop.xlane.xlu2 %571 }
 0x23d   : > { %v588_v31 = vsub.f32 %v556_v57, %v572_v29 }
 0x23f   : > { %v2644_v32 = vpop.eup %2259  ;;  %v599_v33 = vmul.f32 1.442695, %v588_v31 }
 0x240   : > { %v615_v36 = vsel %vm443_vm1, %v2644_v32, 0.0  ;;  %v2650_v37 = vpop.eup %2261 }
 0x241   : > { %2263 = vpow2.f32 %v599_v33  ;;  %628 = vadd.xlane.f32.xlu0 %v627_v34  ;;  %616 = vadd.xlane.f32.xlu1 %v615_v36  ;;  %v630_v41 = vsel %vm443_vm1, %v2650_v37, 0.0 }
 0x247   : > { %v2652_v39 = vpop.eup %2263 }
 0x248   : > { %v618_v40 = vsel %vm443_vm1, %v2652_v39, 0.0 }
 0x249   : > { %619 = vadd.xlane.f32.xlu2 %v618_v40  ;;  %631 = vadd.xlane.f32.xlu1 %v630_v41 }
 0x255   : > { %2213 = vrot.lane.b32.xlu0 %v2212_v42, %s2397_s20 }
 0x262   : > { %2218 = vrot.lane.b32.xlu1 %v2217_v43, %s2397_s20 }
 0x294   : > { %v623_v44 = vpop.xlane.xlu2 %622 }
 0x295   : > { %vm698_vm5 = vweird.f32 %v623_v44  ;;  %v704_v59 = vand.u32 2147483648, %v623_v44  ;;  %v702_v62 = vand.u32 2147483647, %v623_v44 }
 0x297   : > { %v705_v6 = vor.u32 1.1754944e-38, %v704_v59  ;;  %vm703_vm9 = vcmp.eq.f32.partialorder %v702_v62, 8.507059e+37 }
 0x29c   : > { %v626_v45 = vpop.xlane.xlu2 %625 }
 0x29d   : > { %2265 = vrcp.f32 %v626_v45  ;;  %v719_v54 = vand.u32 2147483648, %v626_v45  ;;  %vm713_vm4 = vweird.f32 %v626_v45  ;;  %v717_v57 = vand.u32 2147483647, %v626_v45 }
 0x29e   : > { %2267 = vrcp.f32 %v623_v44 }
 0x29f   : > { %v720_v2 = vor.u32 1.1754944e-38, %v719_v54  ;;  %vm718_vm8 = vcmp.eq.f32.partialorder %v717_v57, 8.507059e+37 }
 0x2a3   : > { %v2266_v46 = vpop.eup %2265 }
 0x2a4   : > { %v2268_v47 = vpop.eup %2267  ;;  %v709_v48 = vmul.f32 %v2266_v46, %v626_v45  ;;  %v2664_v50 = vpop.xlane.xlu2 %610  ;;  %vm714_vm2 = vweird.f32 %v2266_v46 }
 0x2a5   : > { %v694_v49 = vmul.f32 %v2268_v47, %v623_v44  ;;  %2269 = vrcp.f32 %v2664_v50  ;;  %vm699_vm3 = vweird.f32 %v2268_v47  ;;  %vm715_vm6 = vmor %vm713_vm4, %vm714_vm2  ;;  %v644_v16 = vand.u32 2147483648, %v2664_v50 }
 0x2a6   : > { %v710_v51 = vsub.f32 1.0, %v709_v48  ;;  %vm700_vm7 = vmor %vm698_vm5, %vm699_vm3  ;;  %vm638_vm11 = vweird.f32 %v2664_v50  ;;  %v642_v34 = vand.u32 2147483647, %v2664_v50 }
 0x2a7   : > { %v695_v23 = vsub.f32 1.0, %v694_v49  ;;  %v2713_v36 = vor.u32 1.1754944e-38, %v644_v16 }
 0x2a8   : > { %v711_v52 = vmul.f32 %v2266_v46, %v710_v51  ;;  %vm2738_vm3 = vcmp.eq.f32.partialorder %v642_v34, 8.507059e+37 }
 0x2a9   : > { %v696_v19 = vmul.f32 %v2268_v47, %v695_v23  ;;  %v882_v23 = vld [vmem:[%s3326_s4 + $0x8] sm:$0xff] }
 0x2aa   : > { %v712_v53 = vadd.f32 %v2266_v46, %v711_v52 }
 0x2ab   : > { %v2670_v25 = vpop.eup %2269  ;;  %v697_v56 = vadd.f32 %v2268_v47, %v696_v19 }
 0x2ac   : > { %v2667_v28 = vpop.xlane.xlu0 %613  ;;  %v634_v58 = vmul.f32 %v2670_v25, %v2664_v50  ;;  %v716_v63 = vsel %vm715_vm6, %v2266_v46, %v712_v53  ;;  %vm639_vm10 = vweird.f32 %v2670_v25 }
 0x2ad   : > { %2271 = vrcp.f32 %v2667_v28  ;;  %v701_v3 = vsel %vm700_vm7, %v2268_v47, %v697_v56  ;;  %v721_v7 = vsel %vm718_vm8, %v720_v2, %v716_v63  ;;  %v657_v26 = vand.u32 2147483647, %v2667_v28  ;;  %vm2722_vm13 = vmor %vm638_vm11, %vm639_vm10 }
 0x2ae   : > { %v635_v4 = vsub.f32 1.0, %v634_v58  ;;  %v706_v9 = vsel %vm703_vm9, %v705_v6, %v701_v3  ;;  %v758_v13 = vmul.f32 %v2630_v5, %v721_v7  ;;  %v659_v27 = vand.u32 2147483648, %v2667_v28 }
 0x2af   : > { %v757_v22 = vmul.f32 %v2626_v0, %v706_v9  ;;  %vm653_vm14 = vweird.f32 %v2667_v28  ;;  %vm2727_vm15 = vcmp.eq.f32.partialorder %v657_v26, 8.507059e+37 }
 0x2b0   : > { %v636_v14 = vmul.f32 %v2670_v25, %v635_v4  ;;  %v768_v0 = vsel %vm443_vm1, %v758_v13, 0.0  ;;  %v660_v46 = vor.u32 1.1754944e-38, %v659_v27 }
 0x2b1   : > { %v767_v43 = vsel %vm443_vm1, %v757_v22, 0.0 }
 0x2b2   : > { %v2707_v31 = vadd.f32 %v2670_v25, %v636_v14  ;;  %v769_v47 = vadd.f32 %v768_v0, %v767_v43 }
 0x2b3   : > { %v2672_v55 = vpop.eup %2271 }
 0x2b4   : > { %v2676_v60 = vpop.xlane.xlu0 %628  ;;  %v2678_v61 = vpop.xlane.xlu1 %616  ;;  %v649_v1 = vmul.f32 %v2672_v55, %v2667_v28  ;;  %vm654_vm12 = vweird.f32 %v2672_v55  ;;  %v641_v49 = vsel %vm2722_vm13, %v2670_v25, %v2707_v31 }
 0x2b5   : > { %2273 = vrcp.f32 %v2676_v60  ;;  %v732_v42 = vand.u32 2147483647, %v2676_v60  ;;  %vm2742_vm4 = vmor %vm653_vm14, %vm654_vm12  ;;  %vm728_vm5 = vweird.f32 %v2676_v60  ;;  %v734_v52 = vand.u32 2147483648, %v2676_v60 }
 0x2b6   : > { %2275 = vrcp.f32 %v2678_v61  ;;  %v650_v8 = vsub.f32 1.0, %v649_v1  ;;  %vm668_vm6 = vweird.f32 %v2678_v61  ;;  %v672_v56 = vand.u32 2147483647, %v2678_v61 }
 0x2b7   : > { %vm2753_vm7 = vcmp.eq.f32.partialorder %v732_v42, 8.507059e+37  ;;  %v674_v57 = vand.u32 2147483648, %v2678_v61  ;;  %v646_v27 = vsel %vm2738_vm3, %v2713_v36, %v641_v49  ;;  %v883_v49 = vld [vmem:[%s3326_s4 + $0x10] sm:$0xff] }
 0x2b8   : > { %v651_v24 = vmul.f32 %v2672_v55, %v650_v8  ;;  %v735_v8 = vor.u32 1.1754944e-38, %v734_v52  ;;  %v753_v36 = vmul.f32 %v2634_v11, %v646_v27 }
 0x2b9   : > { %v675_v9 = vor.u32 1.1754944e-38, %v674_v57 }
 0x2ba   : > { %v652_v41 = vadd.f32 %v2672_v55, %v651_v24 }
 0x2bb   : > { %v2685_v10 = vpop.eup %2273 }
 0x2bc   : > { %v2689_v15 = vpop.eup %2275  ;;  %v724_v17 = vmul.f32 %v2685_v10, %v2676_v60  ;;  %v2694_v18 = vpop.xlane.xlu2 %619  ;;  %vm729_vm2 = vweird.f32 %v2685_v10  ;;  %v656_v53 = vsel %vm2742_vm4, %v2672_v55, %v652_v41 }
 0x2bd   : > { %v2696_v20 = vpop.xlane.xlu1 %631  ;;  %v664_v5 = vmul.f32 %v2689_v15, %v2678_v61  ;;  %2277 = vrcp.f32 %v2694_v18  ;;  %vm2759_vm8 = vmor %vm728_vm5, %vm729_vm2  ;;  %vm669_vm9 = vweird.f32 %v2689_v15  ;;  %v687_v60 = vand.u32 2147483647, %v2694_v18 }
 0x2be   : > { %v725_v29 = vsub.f32 1.0, %v724_v17  ;;  %2279 = vrcp.f32 %v2696_v20  ;;  %v689_v1 = vand.u32 2147483648, %v2694_v18  ;;  %vm683_vm11 = vweird.f32 %v2694_v18  ;;  %vm2777_vm12 = vmor %vm668_vm6, %vm669_vm9 }
 0x2bf   : > { %v665_v33 = vsub.f32 1.0, %v664_v5  ;;  %v749_v13 = vand.u32 2147483648, %v2696_v20  ;;  %v747_v17 = vand.u32 2147483647, %v2696_v20  ;;  %vm688_vm2 = vcmp.eq.f32.partialorder %v687_v60, 8.507059e+37 }
 0x2c0   : > { %v726_v40 = vmul.f32 %v2685_v10, %v725_v29  ;;  %v690_v24 = vor.u32 1.1754944e-38, %v689_v1  ;;  %vm743_vm4 = vweird.f32 %v2696_v20 }
 0x2c1   : > { %v666_v51 = vmul.f32 %v2689_v15, %v665_v33  ;;  %v750_v31 = vor.u32 1.1754944e-38, %v749_v13  ;;  %vm748_vm6 = vcmp.eq.f32.partialorder %v747_v17, 8.507059e+37 }
 0x2c2   : > { %v727_v50 = vadd.f32 %v2685_v10, %v726_v40 }
 0x2c3   : > { %v2278_v48 = vpop.eup %2277  ;;  %v667_v63 = vadd.f32 %v2689_v15, %v666_v51  ;;  %v881_v51 = vld [vmem:[%s3326_s4] sm:$0xff] }
 0x2c4   : > { %v679_v19 = vmul.f32 %v2278_v48, %v2694_v18  ;;  %v2280_v25 = vpop.eup %2279  ;;  %v731_v55 = vsel %vm2759_vm8, %v2685_v10, %v727_v50  ;;  %vm684_vm10 = vweird.f32 %v2278_v48  ;;  %v661_v18 = vsel %vm2727_vm15, %v660_v46, %v656_v53  ;;  %v884_v50 = vld [vmem:[%s3326_s4 + $0x18] sm:$0xff] }
 0x2c5   : > { %v739_v62 = vmul.f32 %v2280_v25, %v2696_v20  ;;  %vm744_vm13 = vweird.f32 %v2280_v25  ;;  %v736_v22 = vsel %vm2753_vm7, %v735_v8, %v731_v55  ;;  %v671_v61 = vsel %vm2777_vm12, %v2689_v15, %v667_v63  ;;  %vm685_vm14 = vmor %vm683_vm11, %vm684_vm10 }
 0x2c6   : > { %v680_v59 = vsub.f32 1.0, %v679_v19  ;;  %vm673_vm15 = vcmp.eq.f32.partialorder %v672_v56, 8.507059e+37  ;;  %vm745_vm5 = vmor %vm743_vm4, %vm744_vm13  ;;  %v759_v15 = vmul.f32 %v2642_v30, %v736_v22  ;;  %v754_v41 = vmul.f32 %v2638_v21, %v661_v18 }
 0x2c7   : > { %v2214_v2 = vpop.permute.xlu0 %2213  ;;  %v740_v4 = vsub.f32 1.0, %v739_v62  ;;  %v676_v33 = vsel %vm673_vm15, %v675_v9, %v671_v61  ;;  %v2398_v10 = vmov 32.0  }
 0x2c8   : > { %v681_v3 = vmul.f32 %v2278_v48, %v680_v59  ;;  %v2216_v6 = vunpack.i.h.bf16 %v2214_v2  ;;  %v2215_v7 = vunpack.i.l.bf16 %v2214_v2  ;;  %v755_v42 = vmul.f32 %v2644_v32, %v676_v33  ;;  %v1023_v33 = vld [vmem:[%s3327_s5] sm:$0xff] }
 0x2c9   : > { %v741_v16 = vmul.f32 %v2280_v25, %v740_v4  ;;  %v770_v43 = vsel %vm443_vm1, %v759_v15, 0.0  ;;  %v762_v30 = vsel %vm443_vm1, %v754_v41, 0.0  ;;  %v2231_v4 = vld [vmem:[%s3329_s7] ss:$0 sm:$0xff]  ;;  %2281 = vrcp.f32 %v2398_v10  ;;  %v1024_v15 = vld [vmem:[%s3327_s5 + $0x8] sm:$0xff] }
 0x2ca   : > { %v682_v14 = vadd.f32 %v2278_v48, %v681_v3  ;;  %846 = vmatpush.msra.mxu2 %v2215_v7  ;;  %872 = vmatpush.msra.mxu3 %v2216_v6  ;;  %v764_v32 = vsel %vm443_vm1, %v755_v42, 0.0 }
 0x2cb   : > { %2092 = vmatmul.msk.f32.vlgmr.msra.gmra.mxu2 %vm443_vm1, %v769_v47  ;;  %v742_v26 = vadd.f32 %v2280_v25, %v741_v16 }
 0x2cc   : > { %v686_v5 = vsel %vm685_vm14, %v2278_v48, %v682_v14  ;;  %949 = vmatpush.msrb.mxu2 %v883_v49  ;;  %972 = vmatpush.msrb.mxu3 %v884_v50 }
 0x2cd   : > { %v691_v29 = vsel %vm688_vm2, %v690_v24, %v686_v5  ;;  %v746_v0 = vsel %vm745_vm5, %v2280_v25, %v742_v26  ;;  %vm1102_vm2 = vcmask 523264  }
 0x2ce   : > { %v756_v34 = vmul.f32 %v2652_v39, %v691_v29  ;;  %v751_v40 = vsel %vm748_vm6, %v750_v31, %v746_v0  ;;  %v1026_v29 = vld [vmem:[%s3327_s5 + $0x18] sm:$0xff]  ;;  %v1025_v31 = vld [vmem:[%s3327_s5 + $0x10] sm:$0xff] }
 0x2cf   : > { %v760_v20 = vmul.f32 %v2650_v37, %v751_v40  ;;  %v761_v37 = vsel %vm443_vm1, %v753_v36, 0.0  ;;  %v2282_v14 = vpop.eup %2281 }
 0x2d0   : > { %v765_v46 = vsel %vm443_vm1, %v756_v34, 0.0  ;;  %v763_v48 = vadd.f32 %v762_v30, %v761_v37  ;;  %v994_v16 = vmul.f32 32.0, %v2282_v14  ;;  %vm998_vm3 = vweird.f32 %v2282_v14  ;;  %v2234_v37 = vld [vmem:[%s3329_s7 + $0x3] ss:$0 sm:$0xff] }
 0x2d1   : > { %v771_v44 = vsel %vm443_vm1, %v760_v20, 0.0  ;;  %v766_v11 = vadd.f32 %v765_v46, %v764_v32 }
 0x2d2   : > { %v772_v45 = vadd.f32 %v771_v44, %v770_v43  ;;  %v995_v17 = vsub.f32 1.0, %v994_v16 }
 0x2d4   : > { %v2219_v47 = vpop.permute.xlu1 %2218  ;;  %2093 = vmatmul.msk.f32.vlgmr.msra.gmra.mxu3 %vm443_vm1, %v772_v45  ;;  %v996_v18 = vmul.f32 %v2282_v14, %v995_v17  ;;  %v2232_v45 = vld [vmem:[%s3329_s7 + $0x1] ss:$0 sm:$0xff] }
 0x2d5   : > { %v2221_v39 = vunpack.i.h.bf16 %v2219_v47  ;;  %v2220_v21 = vunpack.i.l.bf16 %v2219_v47  ;;  %v2233_v47 = vld [vmem:[%s3329_s7 + $0x2] ss:$0 sm:$0xff] }
 0x2d6   : > { %v997_v22 = vadd.f32 %v2282_v14, %v996_v18 }
 0x2d7   : > { %794 = vmatpush.msrb.mxu0 %v2220_v21  ;;  %820 = vmatpush.msrb.mxu1 %v2221_v39 }
 0x2d8   : > { %2090 = vmatmul.msk.f32.vlgmr.msrb.gmra.mxu0 %vm443_vm1, %v763_v48  ;;  %2091 = vmatmul.msk.f32.vlgmr.msrb.gmra.mxu1 %vm443_vm1, %v766_v11  ;;  %v2836_v61 = vsel %vm998_vm3, %v2282_v14, %v997_v22 }
 0x2d9   : > { %903 = vmatpush.msra.mxu0 %v881_v51  ;;  %926 = vmatpush.msra.mxu1 %v882_v23  ;;  %v1099_v23 = vld [vmem:[%s3328_s6 + $0x38] sm:$0xff] }
 0x2db   : > { %1044 = vmatpush.msrb.mxu0 %v1026_v29  ;;  %1114 = vmatpush.msrb.mxu1 %v1099_v23  ;;  %v2114_v23 = vld [vmem:[%s3324_s2 + $0xf0] sm:$0xff] }
 0x2dd   : > { %1045 = vmatpush.msrb.mxu0 %v1025_v31 }
 0x2df   : > { %1046 = vmatpush.msrb.mxu0 %v1024_v15 }
 0x2e1   : > { %1047 = vmatpush.msrb.mxu0 %v1023_v33  ;;  %v2235_v33 = vld [vmem:[%s3329_s7 + $0x4] ss:$0 sm:$0xff] }
 0x34e   : > { %v848_v28 = vpop.f32.mrf.mxu2 }
 0x34f   : > { %v879_v52 = vmul.f32 0.70710677, %v848_v28  ;;  %v1098_v28 = vld [vmem:[%s3328_s6 + $0x30] sm:$0xff] }
 0x350   : > { %1115 = vmatpush.msrb.mxu1 %v1098_v28 }
 0x351   : > { %2096 = vmatmul.msk.f32.vlgmr.msrb.gmra.mxu2 %vm443_vm1, %v879_v52  ;;  %v1097_v52 = vld [vmem:[%s3328_s6 + $0x28] sm:$0xff] }
 0x352   : > { %1116 = vmatpush.msrb.mxu1 %v1097_v52  ;;  %v2113_v52 = vld [vmem:[%s3324_s2 + $0xe8] sm:$0xff] }
 0x355   : > { %v796_v19 = vpop.f32.mrf.mxu0  ;;  %v822_v25 = vpop.f32.mrf.mxu1 }
 0x356   : > { %v877_v53 = vmul.f32 0.70710677, %v796_v19  ;;  %v878_v54 = vmul.f32 0.70710677, %v822_v25  ;;  %v1096_v19 = vld [vmem:[%s3328_s6 + $0x20] sm:$0xff] }
 0x357   : > { %v874_v56 = vpop.f32.mrf.mxu3  ;;  %1117 = vmatpush.msrb.mxu1 %v1096_v19 }
 0x358   : > { %2094 = vmatmul.msk.f32.vlgmr.msra.gmra.mxu0 %vm443_vm1, %v877_v53  ;;  %2095 = vmatmul.msk.f32.vlgmr.msra.gmra.mxu1 %vm443_vm1, %v878_v54  ;;  %v880_v57 = vmul.f32 0.70710677, %v874_v56  ;;  %v1095_v54 = vld [vmem:[%s3328_s6 + $0x18] sm:$0xff] }
 0x359   : > { %1118 = vmatpush.msrb.mxu1 %v1095_v54 }
 0x35a   : > { %2097 = vmatmul.msk.f32.vlgmr.msrb.gmra.mxu3 %vm443_vm1, %v880_v57  ;;  %v1094_v57 = vld [vmem:[%s3328_s6 + $0x10] sm:$0xff] }
 0x35b   : > { %1119 = vmatpush.msrb.mxu1 %v1094_v57 }
 0x3d4   : > { %v951_v55 = vpop.f32.mrf.mxu2 }
 0x3d5   : > { %v905_v58 = vpop.f32.mrf.mxu0  ;;  %v928_v59 = vpop.f32.mrf.mxu1  ;;  %v980_v1 = vsel %vm356_vm0, %v951_v55, 0.0  ;;  %v1092_v55 = vld [vmem:[%s3328_s6] sm:$0xff] }
 0x3d6   : > { %v977_v60 = vsel %vm356_vm0, %v905_v58, 0.0  ;;  %v978_v62 = vsel %vm356_vm0, %v928_v59, 0.0 }
 0x3d7   : > { %v979_v63 = vadd.f32 %v978_v62, %v977_v60  ;;  %v1093_v62 = vld [vmem:[%s3328_s6 + $0x8] sm:$0xff] }
 0x3d8   : > { %1120 = vmatpush.msrb.mxu1 %v1093_v62  ;;  %v2236_v62 = vld [vmem:[%s3329_s7 + $0x5] ss:$0 sm:$0xff] }
 0x3d9   : > { %v981_v3 = vadd.f32 %v980_v1, %v979_v63 }
 0x3da   : > { %1121 = vmatpush.msrb.mxu1 %v1092_v55 }
 0x3dd   : > { %v974_v2 = vpop.f32.mrf.mxu3 }
 0x3de   : > { %v982_v6 = vsel %vm356_vm0, %v974_v2, 0.0 }
 0x3df   : > { %v983_v7 = vadd.f32 %v982_v6, %v981_v3 }
 0x3e1   : > { %v986_v8 = vadd.f32 %v2231_v4, %v983_v7 }
 0x3e3   : > { %v987_v9 = vadd.f32 %v986_v8, %v2536_v12 }
 0x3e5   : > { %v990_v13 = vsel %vm356_vm0, %v987_v9, 0.0 }
 0x3e6   : > { %991 = vadd.xlane.f32.xlu2 %v990_v13 }
 0x459   : > { %v992_v24 = vpop.xlane.xlu2 %991 }
 0x45a   : > { %v1000_v5 = vmul.f32 %v2836_v61, %v992_v24 }
 0x45c   : > { %v1001_v26 = vsub.f32 %v987_v9, %v1000_v5 }
 0x45e   : > { %v1002_v27 = vmul.f32 %v1001_v26, %v1001_v26 }
 0x460   : > { %v1003_v12 = vsel %vm356_vm0, %v1002_v27, 0.0 }
 0x461   : > { %1004 = vadd.xlane.f32.xlu2 %v1003_v12 }
 0x4d4   : > { %v1005_v0 = vpop.xlane.xlu2 %1004 }
 0x4d5   : > { %v1006_v34 = vmul.f32 %v1005_v0, %v2836_v61 }
 0x4d7   : > { %v1007_v40 = vadd.f32 1e-12, %v1006_v34 }
 0x4d9   : > { %2283 = vrsqrt.f32 %v1007_v40  ;;  %vm1014_vm8 = vweird.f32 %v1007_v40 }
 0x4df   : > { %v2284_v41 = vpop.eup %2283 }
 0x4e0   : > { %v1009_v20 = vmul.f32 %v2284_v41, %v1007_v40  ;;  %vm1015_vm7 = vweird.f32 %v2284_v41 }
 0x4e1   : > { %vm1016_vm9 = vmor %vm1014_vm8, %vm1015_vm7 }
 0x4e2   : > { %v1010_v42 = vmul.f32 %v2284_v41, %v1009_v20 }
 0x4e4   : > { %v1011_v36 = vmul.f32 0.5, %v1010_v42 }
 0x4e6   : > { %v1012_v43 = vsub.f32 1.5, %v1011_v36 }
 0x4e8   : > { %v1013_v44 = vmul.f32 %v2284_v41, %v1012_v43 }
 0x4ea   : > { %v1017_v30 = vsel %vm1016_vm9, %v2284_v41, %v1013_v44 }
 0x4eb   : > { %v1018_v46 = vmul.f32 %v1017_v30, %v1001_v26  ;;  %v2107_v30 = vld [vmem:[%s3324_s2 + $0xb8] sm:$0xff] }
 0x4ec   : > { %1224 = vmatpush.msra.mxu3 %v2107_v30 }
 0x4ed   : > { %v1020_v39 = vmul.f32 %v2232_v45, %v1018_v46  ;;  %v2103_v45 = vld [vmem:[%s3324_s2 + $0x98] sm:$0xff] }
 0x4ee   : > { %v2111_v46 = vld [vmem:[%s3324_s2 + $0xd8] sm:$0xff]  ;;  %1204 = vmatpush.msra.mxu2 %v2103_v45 }
 0x4ef   : > { %v2859_v21 = vadd.f32 %v2233_v47, %v1020_v39  ;;  %1244 = vmatpush.msra.mxu0 %v2111_v46  ;;  %v2102_v47 = vld [vmem:[%s3324_s2 + $0x90] sm:$0xff] }
 0x4f0   : > { %v2106_v39 = vld [vmem:[%s3324_s2 + $0xb0] sm:$0xff]  ;;  %1205 = vmatpush.msra.mxu2 %v2102_v47 }
 0x4f1   : > { %2098 = vmatmul.msk.f32.vlgmr.msrb.gmra.mxu0 %vm356_vm0, %v2859_v21  ;;  %1225 = vmatpush.msra.mxu3 %v2106_v39 }
 0x56e   : > { %v1049_v32 = vpop.f32.mrf.mxu0 }
 0x56f   : > { %v1050_v48 = vadd.f32 %v2234_v37, %v1049_v32  ;;  %v2101_v37 = vld [vmem:[%s3324_s2 + $0x88] sm:$0xff] }
 0x570   : > { %v2105_v32 = vld [vmem:[%s3324_s2 + $0xa8] sm:$0xff]  ;;  %1206 = vmatpush.msra.mxu2 %v2101_v37 }
 0x571   : > { %v1053_v11 = vmul.f32 0.70710677, %v1050_v48  ;;  %v1052_v29 = vmul.f32 0.5, %v1050_v48  ;;  %v2109_v48 = vld [vmem:[%s3324_s2 + $0xc8] sm:$0xff]  ;;  %1226 = vmatpush.msra.mxu3 %v2105_v32 }
 0x572   : > { %v2331_v37 = vld [vmem:[%s2602_s13 + $0x8] sm:$0xff]  ;;  %s1998_s13 = sshll.u32 %s1994_s22, 4  ;;  %s1999_s13 = int_to_ptr.hbm [resolvable:$true] %s1998_s13 }
 0x573   : > { %v1054_v49 = vand.u32 2147483647, %v1053_v11  ;;  %vm1087_vm14 = vcmp.ge.f32.partialorder %v1053_v11, 0.0  ;;  %v2100_v11 = vld [vmem:[%s3324_s2 + $0x80] sm:$0xff]  ;;  %s2346_s12 = sshra.s32 %s1999_s13, 4  ;;  %s2347_s12 = int_to_ptr.hbm [resolvable:$true] %s2346_s12 }
 0x574   : > { %1207 = vmatpush.msra.mxu2 %v2100_v11  ;;  %s2348_s10 = scalar_lea.hbm %s2347_s12, 8  ;;  %p2353_p0 = scmp.lt.s32.totalorder %s2347_s12, %s3330_s8 }
 0x575   : > { %v1055_v50 = vmul.f32 0.3275911, %v1054_v49  ;;  %v1081_v4 = vsub.f32 0.0, %v1054_v49  ;;  %p2349_p11 = scmp.ne.s32.totalorder %s2347_s12, %s2348_s10 }
 0x577   : > { %v1056_v51 = vadd.f32 1.0, %v1055_v50  ;;  %v1082_v8 = vmul.f32 %v1081_v4, %v1054_v49  ;;  %v2104_v49 = vld [vmem:[%s3324_s2 + $0xa0] sm:$0xff]  ;;  %p2350_p12 = pnand %p2349_p11, %p2482_p5 }
 0x578   : > { %v2108_v50 = vld [vmem:[%s3324_s2 + $0xc0] sm:$0xff]  ;;  %1227 = vmatpush.msra.mxu3 %v2104_v49 }
 0x579   : > { %2285 = vrcp.f32 %v1056_v51  ;;  %v1068_v58 = vand.u32 2147483648, %v1056_v51  ;;  %v1066_v60 = vand.u32 2147483647, %v1056_v51  ;;  %vm1062_vm11 = vweird.f32 %v1056_v51  ;;  %v2239_v4 = vld [vmem:[%s3325_s3 + $0x4] ss:$0 sm:$0xff]  ;;  %p2351_p13 = pneg %p2350_p12 }
 0x57a   : > { %v1083_v10 = vmul.f32 1.442695, %v1082_v8  ;;  %v2240_v8 = vld [vmem:[%s3325_s3 + $0x5] ss:$0 sm:$0xff] }
 0x57b   : > { %v1069_v1 = vor.u32 1.1754944e-38, %v1068_v58  ;;  %vm1067_vm13 = vcmp.eq.f32.partialorder %v1066_v60, 8.507059e+37 }
 0x57c   : > { %2287 = vpow2.f32 %v1083_v10 }
 0x57f   : > { %v2286_v25 = vpop.eup %2285 }
 0x580   : > { %v1058_v53 = vmul.f32 %v2286_v25, %v1056_v51  ;;  %vm1063_vm10 = vweird.f32 %v2286_v25  ;;  %v2115_v51 = vld [vmem:[%s3324_s2 + $0xf8] sm:$0xff] }
 0x581   : > { %vm1064_vm12 = vmor %vm1062_vm11, %vm1063_vm10  ;;  %1264 = vmatpush.msrb.mxu2 %v2115_v51 }
 0x582   : > { %v1059_v56 = vsub.f32 1.0, %v1058_v53  ;;  %v2288_v24 = vpop.eup %2287 }
 0x583   : > { %1265 = vmatpush.msrb.mxu2 %v2114_v23 }
 0x584   : > { %v1060_v59 = vmul.f32 %v2286_v25, %v1059_v56 }
 0x585   : > { %1266 = vmatpush.msrb.mxu2 %v2113_v52 }
 0x586   : > { %v1061_v63 = vadd.f32 %v2286_v25, %v1060_v59 }
 0x588   : > { %v1065_v2 = vsel %vm1064_vm12, %v2286_v25, %v1061_v63  ;;  %v2112_v25 = vld [vmem:[%s3324_s2 + $0xe0] sm:$0xff] }
 0x589   : > { %v1070_v3 = vsel %vm1067_vm13, %v1069_v1, %v1065_v2  ;;  %1267 = vmatpush.msrb.mxu2 %v2112_v25  ;;  %v2237_v1 = vld [vmem:[%s3329_s7 + $0x6] ss:$0 sm:$0xff] }
 0x58a   : > { %v1072_v6 = vmul.f32 1.0614054, %v1070_v3 }
 0x58c   : > { %v1073_v7 = vadd.f32 -1.4531521, %v1072_v6 }
 0x58e   : > { %v1074_v9 = vmul.f32 %v1073_v7, %v1070_v3 }
 0x590   : > { %v1075_v13 = vadd.f32 1.4214138, %v1074_v9  ;;  %v2241_v9 = vld [vmem:[%s3325_s3 + $0x7] ss:$0 sm:$0xff] }
 0x592   : > { %v1076_v14 = vmul.f32 %v1075_v13, %v1070_v3 }
 0x594   : > { %v1077_v16 = vadd.f32 -0.28449672, %v1076_v14 }
 0x596   : > { %v1078_v17 = vmul.f32 %v1077_v16, %v1070_v3 }
 0x598   : > { %v1079_v18 = vadd.f32 0.2548296, %v1078_v17  ;;  %v2238_v17 = vld [vmem:[%s3325_s3 + $0x6] ss:$0 sm:$0xff] }
 0x59a   : > { %v1080_v22 = vmul.f32 %v1079_v18, %v1070_v3 }
 0x59c   : > { %v1085_v5 = vmul.f32 %v2288_v24, %v1080_v22 }
 0x59e   : > { %v1086_v26 = vsub.f32 1.0, %v1085_v5 }
 0x5a0   : > { %v1088_v27 = vsub.f32 0.0, %v1086_v26 }
 0x5a2   : > { %v1089_v12 = vsel %vm1087_vm14, %v1086_v26, %v1088_v27 }
 0x5a3   : > { %v1090_v31 = vadd.f32 1.0, %v1089_v12 }
 0x5a5   : > { %v1091_v15 = vmul.f32 %v1090_v31, %v1052_v29 }
 0x5a7   : > { %2099 = vmatmul.msk.f32.vlgmr.msrb.gmra.mxu1 %vm1102_vm2, %v1091_v15 }
 0x624   : > { %v1123_v0 = vpop.f32.mrf.mxu1 }
 0x625   : > { %v1124_v34 = vadd.f32 %v2235_v33, %v1123_v0 }
 0x627   : > { %v1126_v40 = vadd.f32 %v1124_v34, %v2859_v21  ;;  %v2110_v21 = vld [vmem:[%s3324_s2 + $0xd0] sm:$0xff] }
 0x628   : > { %1245 = vmatpush.msra.mxu0 %v2110_v21 }
 0x629   : > { %v1129_v41 = vsel %vm356_vm0, %v1126_v40, 0.0 }
 0x62a   : > { %1130 = vadd.xlane.f32.xlu0 %v1129_v41  ;;  %1246 = vmatpush.msra.mxu0 %v2109_v48 }
 0x62c   : > { %1247 = vmatpush.msra.mxu0 %v2108_v50 }
 0x69d   : > { %v1131_v20 = vpop.xlane.xlu0 %1130 }
 0x69e   : > { %v1132_v42 = vmul.f32 %v1131_v20, %v2836_v61 }
 0x6a0   : > { %v1133_v36 = vsub.f32 %v1126_v40, %v1132_v42 }
 0x6a2   : > { %v1134_v43 = vmul.f32 %v1133_v36, %v1133_v36 }
 0x6a4   : > { %v1135_v44 = vsel %vm356_vm0, %v1134_v43, 0.0 }
 0x6a5   : > { %1136 = vadd.xlane.f32.xlu2 %v1135_v44 }
 0x718   : > { %v1137_v28 = vpop.xlane.xlu2 %1136 }
 0x719   : > { %v1138_v19 = vmul.f32 %v1137_v28, %v2836_v61 }
 0x71b   : > { %v1139_v53 = vadd.f32 1e-12, %v1138_v19 }
 0x71d   : > { %2289 = vrsqrt.f32 %v1139_v53  ;;  %vm1146_vm15 = vweird.f32 %v1139_v53 }
 0x723   : > { %v2290_v54 = vpop.eup %2289 }
 0x724   : > { %v1141_v56 = vmul.f32 %v2290_v54, %v1139_v53  ;;  %vm1147_vm4 = vweird.f32 %v2290_v54 }
 0x725   : > { %vm1148_vm5 = vmor %vm1146_vm15, %vm1147_vm4 }
 0x726   : > { %v1142_v57 = vmul.f32 %v2290_v54, %v1141_v56 }
 0x728   : > { %v1143_v58 = vmul.f32 0.5, %v1142_v57 }
 0x72a   : > { %v1144_v59 = vsub.f32 1.5, %v1143_v58 }
 0x72c   : > { %v1145_v60 = vmul.f32 %v2290_v54, %v1144_v59 }
 0x72e   : > { %v1149_v55 = vsel %vm1148_vm5, %v2290_v54, %v1145_v60 }
 0x72f   : > { %v1150_v63 = vmul.f32 %v1149_v55, %v1133_v36 }
 0x731   : > { %v1152_v2 = vmul.f32 %v2236_v62, %v1150_v63 }
 0x733   : > { %v2953_v3 = vadd.f32 %v2237_v1, %v1152_v2 }
 0x735   : > { %2120 = vmatmul.msk.f32.vlgmr.msra.gmra.mxu2 %vm356_vm0, %v2953_v3  ;;  %2121 = vmatmul.msk.f32.vlgmr.msra.gmra.mxu3 %vm356_vm0, %v2953_v3 }
 0x736   : > { %2122 = vmatmul.msk.f32.vlgmr.msra.gmra.mxu0 %vm356_vm0, %v2953_v3 }
 0x73d   : > { %2123 = vmatmul.msk.f32.vlgmr.msrb.gmra.mxu2 %vm356_vm0, %v2953_v3 }
 0x7b3   : > { %v1249_v18 = vpop.f32.mrf.mxu0 }
 0x7b4   : > { %v2987_v22 = vadd.f32 %v2238_v17, %v1249_v18 }
 0x7b8   : > { %v1209_v6 = vpop.f32.mrf.mxu2  ;;  %v1229_v13 = vpop.f32.mrf.mxu3 }
 0x7b9   : > { %v2966_v7 = vadd.f32 %v2239_v4, %v1209_v6  ;;  %v2976_v14 = vadd.f32 %v2240_v8, %v1229_v13 }
 0x7bb   : > { %1273 = vrot.lane.b32.xlu1 %v2966_v7, %s2396_s18 }
 0x7c0   : > { %v1269_v10 = vpop.f32.mrf.mxu2 }
 0x7c1   : > { %v2978_v16 = vadd.f32 %v2241_v9, %v1269_v10 }
 0x7c3   : > { %1354 = vrot.lane.b32.xlu2 %v2978_v16, %s2396_s18  ;;  %1300 = vrot.lane.b32.xlu1 %v2976_v14, %s2396_s18 }
 0x7cb   : > { %1327 = vrot.lane.b32.xlu1 %v2987_v22, %s2396_s18  ;;  %s311_s18 = scalar_lea.vmem [#allocation2], %s2074_s26  ;;  %s2352_s26 = scalar_lea.hbm %s3330_s8, 16 }
 0x7cc   : > { %s1996_s9 = sshll.u32 %s311_s18, 4  ;;  %p2354_p1 = scmp.lt.s32.totalorder %s2352_s26, %s2348_s10  ;;  %s1997_s9 = int_to_ptr.vmem [resolvable:$true] %s1996_s9 }
 0x7ce   : > { %p2355_p2 = por %p2354_p1, %p2353_p0 }
 0x7d0   : > { %p2356_p3 = pnand %p2355_p2, %p2351_p13 }
 0x81d   : > { %v1355_v24 = vpop.permute.xlu2 %1354 }
 0x81e   : > { %2130 = vmatpush.xpose.msk.msra.mxu2 %vm443_vm1, %v1355_v24 }
 0x821   : > { %2131 = vmatmul.msk.f32.vlgmr.msra.gmra.mxu2 %vm443_vm1, %v2978_v16 }
 0x82d   : > { %v1274_v5 = vpop.permute.xlu1 %1273 }
 0x82e   : > { %2124 = vmatpush.xpose.msk.msrb.mxu3 %vm443_vm1, %v1274_v5 }
 0x831   : > { %2125 = vmatmul.msk.f32.vlgmr.msrb.gmra.mxu3 %vm443_vm1, %v2966_v7 }
 0x835   : > { %v1301_v26 = vpop.permute.xlu1 %1300 }
 0x836   : > { %2126 = vmatpush.xpose.msk.msrb.mxu0 %vm443_vm1, %v1301_v26 }
 0x839   : > { %2127 = vmatmul.msk.f32.vlgmr.msrb.gmra.mxu0 %vm443_vm1, %v2976_v14 }
 0x83d   : > { %v1328_v27 = vpop.permute.xlu1 %1327 }
 0x83e   : > { %2128 = vmatpush.xpose.msk.msra.mxu1 %vm443_vm1, %v1328_v27 }
 0x841   : > { %2129 = vmatmul.msk.f32.vlgmr.msra.gmra.mxu1 %vm443_vm1, %v2987_v22 }
 0x8a4   : > { %v1377_v34 = vpop.f32.mrf.mxu2 }
 0x8a5   : > { %v1383_v42 = vmul.f32 0.35355338, %v1377_v34 }
 0x8a7   : > { %v1390_v45 = vadd.f32 %v1383_v42, %v2605_v35  ;;  %v1391_v39 = vadd.f32 %v1383_v42, %v2610_v38 }
 0x8a9   : > { %v1410_v46 = vsel %vm443_vm1, %v1390_v45, -inf  ;;  %v1413_v21 = vsel %vm443_vm1, %v1391_v39, -inf }
 0x8b4   : > { %v1296_v12 = vpop.f32.mrf.mxu3 }
 0x8b5   : > { %v1380_v29 = vmul.f32 0.35355338, %v1296_v12 }
 0x8b6   : > { %v1323_v31 = vpop.f32.mrf.mxu0 }
 0x8b7   : > { %v1381_v15 = vmul.f32 0.35355338, %v1323_v31  ;;  %v3004_v33 = vadd.f32 %v1380_v29, %v2610_v38  ;;  %v1384_v0 = vadd.f32 %v1380_v29, %v2605_v35 }
 0x8b9   : > { %v1395_v40 = vsel %vm443_vm1, %v3004_v33, -inf  ;;  %v1392_v41 = vsel %vm443_vm1, %v1384_v0, -inf  ;;  %v1386_v20 = vadd.f32 %v1381_v15, %v2605_v35  ;;  %v1387_v32 = vadd.f32 %v2331_v37, %v1381_v15 }
 0x8ba   : > { %1396 = vmax.xlane.f32.xlu2 %v1395_v40  ;;  %1393 = vmax.xlane.f32.xlu1 %v1392_v41  ;;  %v2222_v40 = vpack.i.bf16 %v2987_v22, %v2976_v14 }
 0x8bb   : > { %v1398_v36 = vsel %vm443_vm1, %v1386_v20, -inf  ;;  %v1401_v48 = vsel %vm443_vm1, %v1387_v32, -inf }
 0x8bc   : > { %1399 = vmax.xlane.f32.xlu0 %v1398_v36 }
 0x8be   : > { %v1350_v43 = vpop.f32.mrf.mxu1 }
 0x8bf   : > { %v1382_v44 = vmul.f32 0.35355338, %v1350_v43 }
 0x8c1   : > { %v1388_v30 = vadd.f32 %v1382_v44, %v2605_v35  ;;  %v1389_v11 = vadd.f32 %v2331_v37, %v1382_v44 }
 0x8c3   : > { %v1404_v47 = vsel %vm443_vm1, %v1388_v30, -inf  ;;  %v1407_v49 = vsel %vm443_vm1, %v1389_v11, -inf }
 0x8c4   : > { %1411 = vmax.xlane.f32.xlu0 %v1410_v46  ;;  %1405 = vmax.xlane.f32.xlu1 %v1404_v47 }
 0x8cc   : > { %1414 = vmax.xlane.f32.xlu0 %v1413_v21 }
 0x8d4   : > { %1402 = vmax.xlane.f32.xlu0 %v1401_v48 }
 0x8dc   : > { %1408 = vmax.xlane.f32.xlu0 %v1407_v49 }
 0x92d   : > { %v1394_v35 = vpop.xlane.xlu1 %1393  ;;  %v1397_v24 = vpop.xlane.xlu2 %1396 }
 0x92e   : > { %v1416_v19 = vsub.f32 %v1384_v0, %v1394_v35  ;;  %v1417_v27 = vsub.f32 %v3004_v33, %v1397_v24 }
 0x92f   : > { %v1400_v50 = vpop.xlane.xlu0 %1399 }
 0x930   : > { %v1424_v38 = vmul.f32 1.442695, %v1416_v19  ;;  %v1418_v9 = vsub.f32 %v1386_v20, %v1400_v50  ;;  %v1426_v31 = vmul.f32 1.442695, %v1417_v27 }
 0x932   : > { %v1428_v18 = vmul.f32 1.442695, %v1418_v9 }
 0x937   : > { %v1412_v51 = vpop.xlane.xlu0 %1411  ;;  %v1406_v23 = vpop.xlane.xlu1 %1405 }
 0x938   : > { %v1420_v28 = vsub.f32 %v1388_v30, %v1406_v23  ;;  %v1422_v62 = vsub.f32 %v1390_v45, %v1412_v51 }
 0x93a   : > { %v1432_v52 = vmul.f32 1.442695, %v1420_v28  ;;  %v1436_v1 = vmul.f32 1.442695, %v1422_v62 }
 0x93c   : > { %2291 = vpow2.f32 %v1432_v52 }
 0x93d   : > { %2293 = vpow2.f32 %v1424_v38 }
 0x93f   : > { %v1415_v25 = vpop.xlane.xlu0 %1414 }
 0x940   : > { %v1423_v54 = vsub.f32 %v1391_v39, %v1415_v25 }
 0x942   : > { %v3021_v53 = vpop.eup %2291  ;;  %v1438_v57 = vmul.f32 1.442695, %v1423_v54 }
 0x943   : > { %v1452_v56 = vsel %vm443_vm1, %v3021_v53, 0.0  ;;  %v3025_v60 = vpop.eup %2293 }
 0x944   : > { %1453 = vadd.xlane.f32.xlu2 %v1452_v56  ;;  %2295 = vpow2.f32 %v1438_v57  ;;  %v1440_v63 = vsel %vm443_vm1, %v3025_v60, 0.0 }
 0x947   : > { %v1403_v58 = vpop.xlane.xlu0 %1402 }
 0x948   : > { %v1419_v59 = vsub.f32 %v1387_v32, %v1403_v58 }
 0x94a   : > { %v1430_v55 = vmul.f32 1.442695, %v1419_v59  ;;  %v3029_v6 = vpop.eup %2295 }
 0x94b   : > { %v1461_v17 = vsel %vm443_vm1, %v3029_v6, 0.0 }
 0x94c   : > { %2297 = vpow2.f32 %v1430_v55  ;;  %1441 = vadd.xlane.f32.xlu2 %v1440_v63 }
 0x94d   : > { %2299 = vpow2.f32 %v1436_v1 }
 0x94f   : > { %v1409_v2 = vpop.xlane.xlu0 %1408 }
 0x950   : > { %v1421_v4 = vsub.f32 %v1389_v11, %v1409_v2 }
 0x952   : > { %v3031_v8 = vpop.eup %2297  ;;  %v1434_v13 = vmul.f32 1.442695, %v1421_v4 }
 0x953   : > { %v1449_v10 = vsel %vm443_vm1, %v3031_v8, 0.0  ;;  %v3037_v5 = vpop.eup %2299 }
 0x954   : > { %2301 = vpow2.f32 %v1434_v13  ;;  %1450 = vadd.xlane.f32.xlu0 %v1449_v10  ;;  %1462 = vadd.xlane.f32.xlu2 %v1461_v17  ;;  %v1458_v12 = vsel %vm443_vm1, %v3037_v5, 0.0 }
 0x955   : > { %2303 = vpow2.f32 %v1428_v18 }
 0x956   : > { %2305 = vpow2.f32 %v1426_v31 }
 0x95a   : > { %v3039_v26 = vpop.eup %2301 }
 0x95b   : > { %v1455_v29 = vsel %vm443_vm1, %v3039_v26, 0.0  ;;  %v3046_v15 = vpop.eup %2303 }
 0x95c   : > { %1459 = vadd.xlane.f32.xlu0 %v1458_v12  ;;  %1456 = vadd.xlane.f32.xlu1 %v1455_v29  ;;  %v1446_v0 = vsel %vm443_vm1, %v3046_v15, 0.0  ;;  %v3050_v34 = vpop.eup %2305 }
 0x95d   : > { %v1443_v33 = vsel %vm443_vm1, %v3050_v34, 0.0 }
 0x964   : > { %1447 = vadd.xlane.f32.xlu1 %v1446_v0 }
 0x96c   : > { %1444 = vadd.xlane.f32.xlu1 %v1443_v33  ;;  %1682 = vrot.lane.b32.xlu2 %v2978_v16, %s2397_s20 }
 0x970   : > { %1604 = vrot.lane.b32.xlu0 %v2966_v7, %s2397_s20 }
 0x985   : > { %2223 = vrot.lane.b32.xlu1 %v2222_v40, %s2397_s20  ;;  %s1984_s20 = scalar_lea.sflag [#allocation3], %s309_s25 }
 0x9b7   : > { %v3061_v41 = vpop.xlane.xlu2 %1453 }
 0x9b8   : > { %v1535_v59 = vand.u32 2147483648, %v3061_v41  ;;  %vm1529_vm15 = vweird.f32 %v3061_v41 }
 0x9bf   : > { %v3063_v20 = vpop.xlane.xlu2 %1441 }
 0x9c0   : > { %v1473_v27 = vand.u32 2147483647, %v3063_v20  ;;  %v1475_v12 = vand.u32 2147483648, %v3063_v20  ;;  %vm1469_vm4 = vweird.f32 %v3063_v20 }
 0x9c7   : > { %v3065_v42 = vpop.xlane.xlu0 %1450  ;;  %v1463_v36 = vpop.xlane.xlu2 %1462 }
 0x9c8   : > { %2307 = vrcp.f32 %v1463_v36  ;;  %v1580_v37 = vand.u32 2147483648, %v1463_v36  ;;  %vm1574_vm3 = vweird.f32 %v1463_v36  ;;  %v1578_v48 = vand.u32 2147483647, %v1463_v36 }
 0x9c9   : > { %2309 = vrcp.f32 %v3063_v20 }
 0x9ca   : > { %2311 = vrcp.f32 %v3061_v41  ;;  %v1581_v52 = vor.u32 1.1754944e-38, %v1580_v37  ;;  %vm1579_vm8 = vcmp.eq.f32.partialorder %v1578_v48, 8.507059e+37  ;;  %v1520_v37 = vand.u32 2147483648, %v3065_v42 }
 0x9ce   : > { %v2308_v7 = vpop.eup %2307 }
 0x9cf   : > { %v1460_v16 = vpop.xlane.xlu0 %1459  ;;  %v3069_v43 = vpop.xlane.xlu1 %1456  ;;  %v1570_v44 = vmul.f32 %v2308_v7, %v1463_v36  ;;  %vm1575_vm6 = vweird.f32 %v2308_v7 }
 0x9d0   : > { %2313 = vrcp.f32 %v1460_v16  ;;  %v1683_v14 = vpop.permute.xlu2 %1682  ;;  %v3071_v22 = vpop.eup %2309  ;;  %vm1576_vm7 = vmor %vm1574_vm3, %vm1575_vm6  ;;  %v1565_v19 = vand.u32 2147483648, %v1460_v16  ;;  %v1563_v54 = vand.u32 2147483647, %v1460_v16  ;;  %vm1559_vm10 = vweird.f32 %v1460_v16 }
 0x9d1   : > { %1703 = vmatpush.msrb.mxu2 %v1683_v14  ;;  %v3073_v45 = vpop.eup %2311  ;;  %v1571_v30 = vsub.f32 1.0, %v1570_v44  ;;  %2315 = vrcp.f32 %v3069_v43  ;;  %v1465_v46 = vmul.f32 %v3071_v22, %v3063_v20  ;;  %vm1470_vm11 = vweird.f32 %v3071_v22 }
 0x9d2   : > { %2317 = vrcp.f32 %v3065_v42  ;;  %v1525_v21 = vmul.f32 %v3073_v45, %v3061_v41  ;;  %v1566_v2 = vor.u32 1.1754944e-38, %v1565_v19  ;;  %vm1564_vm13 = vcmp.eq.f32.partialorder %v1563_v54, 8.507059e+37  ;;  %vm3116_vm5 = vmor %vm1469_vm4, %vm1470_vm11 }
 0x9d3   : > { %v1572_v47 = vmul.f32 %v2308_v7, %v1571_v30  ;;  %v1466_v35 = vsub.f32 1.0, %v1465_v46  ;;  %vm1530_vm14 = vweird.f32 %v3073_v45  ;;  %v1533_v30 = vand.u32 2147483647, %v3061_v41 }
 0x9d4   : > { %v1526_v28 = vsub.f32 1.0, %v1525_v21  ;;  %vm3127_vm6 = vmor %vm1529_vm15, %vm1530_vm14  ;;  %v1536_v46 = vor.u32 1.1754944e-38, %v1535_v59  ;;  %vm1474_vm3 = vcmp.eq.f32.partialorder %v1473_v27, 8.507059e+37  ;;  %v1518_v54 = vand.u32 2147483647, %v3065_v42 }
 0x9d5   : > { %v1573_v32 = vadd.f32 %v2308_v7, %v1572_v47  ;;  %v1467_v56 = vmul.f32 %v3071_v22, %v1466_v35  ;;  %v1476_v47 = vor.u32 1.1754944e-38, %v1475_v12  ;;  %v1550_v35 = vand.u32 2147483648, %v3069_v43 }
 0x9d6   : > { %v2314_v39 = vpop.eup %2313  ;;  %v1527_v63 = vmul.f32 %v3073_v45, %v1526_v28  ;;  %v1521_v59 = vor.u32 1.1754944e-38, %v1520_v37 }
 0x9d7   : > { %v1555_v11 = vmul.f32 %v2314_v39, %v1460_v16  ;;  %v3081_v49 = vpop.xlane.xlu1 %1447  ;;  %v3084_v50 = vpop.eup %2315  ;;  %v1577_v51 = vsel %vm1576_vm7, %v2308_v7, %v1573_v32  ;;  %vm1560_vm9 = vweird.f32 %v2314_v39  ;;  %v1468_v17 = vadd.f32 %v3071_v22, %v1467_v56 }
 0x9d8   : > { %2319 = vrcp.f32 %v3081_v49  ;;  %v3086_v38 = vpop.eup %2317  ;;  %v1582_v57 = vsel %vm1579_vm8, %v1581_v52, %v1577_v51  ;;  %v1540_v58 = vmul.f32 %v3084_v50, %v3069_v43  ;;  %vm1561_vm12 = vmor %vm1559_vm10, %vm1560_vm9  ;;  %v3109_v31 = vadd.f32 %v3073_v45, %v1527_v63  ;;  %v2149_v63 = vld [vmem:[%s3327_s5 + $0x30] sm:$0xff] }
 0x9d9   : > { %v1556_v23 = vsub.f32 1.0, %v1555_v11  ;;  %v1510_v1 = vmul.f32 %v3086_v38, %v3065_v42  ;;  %v1591_v4 = vmul.f32 %v3029_v6, %v1582_v57  ;;  %v1472_v16 = vsel %vm3116_vm5, %v3071_v22, %v1468_v17 }
 0x9da   : > { %v1541_v24 = vsub.f32 1.0, %v1540_v58  ;;  %v1532_v22 = vsel %vm3127_vm6, %v3073_v45, %v3109_v31  ;;  %vm1514_vm7 = vweird.f32 %v3065_v42  ;;  %v1477_v32 = vsel %vm1474_vm3, %v1476_v47, %v1472_v16 }
 0x9db   : > { %v1557_v25 = vmul.f32 %v2314_v39, %v1556_v23  ;;  %v1511_v0 = vsub.f32 1.0, %v1510_v1  ;;  %v1602_v36 = vsel %vm443_vm1, %v1591_v4, 0.0  ;;  %vm1515_vm8 = vweird.f32 %v3086_v38 }
 0x9dc   : > { %v1542_v20 = vmul.f32 %v3084_v50, %v1541_v24  ;;  %vm1545_vm9 = vweird.f32 %v3084_v50  ;;  %vm1544_vm10 = vweird.f32 %v3069_v43  ;;  %v1548_v11 = vand.u32 2147483647, %v3069_v43  ;;  %vm3175_vm15 = vmor %vm1514_vm7, %vm1515_vm8 }
 0x9dd   : > { %v1558_v62 = vadd.f32 %v2314_v39, %v1557_v25  ;;  %v1512_v21 = vmul.f32 %v3086_v38, %v1511_v0  ;;  %v1505_v51 = vand.u32 2147483648, %v3081_v49  ;;  %v1503_v19 = vand.u32 2147483647, %v3081_v49 }
 0x9de   : > { %v3092_v55 = vpop.eup %2319  ;;  %v1543_v48 = vadd.f32 %v3084_v50, %v1542_v20  ;;  %v1584_v58 = vmul.f32 %v3025_v60, %v1477_v32  ;;  %v1551_v1 = vor.u32 1.1754944e-38, %v1550_v35  ;;  %vm1549_vm6 = vcmp.eq.f32.partialorder %v1548_v11, 8.507059e+37  ;;  %v2137_v20 = vld [vmem:[%s3326_s4 + $0x28] sm:$0xff] }
 0x9df   : > { %v1562_v9 = vsel %vm1561_vm12, %v2314_v39, %v1558_v62  ;;  %v1495_v13 = vmul.f32 %v3092_v55, %v3081_v49  ;;  %v3101_v10 = vpop.xlane.xlu1 %1444  ;;  %vm1500_vm11 = vweird.f32 %v3092_v55  ;;  %v1513_v28 = vadd.f32 %v3086_v38, %v1512_v21  ;;  %vm3151_vm12 = vmor %vm1544_vm10, %vm1545_vm9 }
 0x9e0   : > { %v1567_v18 = vsel %vm1564_vm13, %v1566_v2, %v1562_v9  ;;  %2321 = vrcp.f32 %v3101_v10  ;;  %vm1499_vm13 = vweird.f32 %v3081_v49  ;;  %v1490_v25 = vand.u32 2147483648, %v3101_v10 }
 0x9e1   : > { %v1590_v29 = vmul.f32 %v3037_v5, %v1567_v18  ;;  %v1496_v6 = vsub.f32 1.0, %v1495_v13  ;;  %vm3159_vm14 = vmor %vm1499_vm13, %vm1500_vm11  ;;  %v1488_v57 = vand.u32 2147483647, %v3101_v10  ;;  %v1547_v62 = vsel %vm3151_vm12, %v3084_v50, %v1543_v48 }
 0x9e2   : > { %v1605_v33 = vpop.permute.xlu0 %1604  ;;  %v1506_v2 = vor.u32 1.1754944e-38, %v1505_v51  ;;  %vm1484_vm5 = vweird.f32 %v3101_v10  ;;  %v1517_v50 = vsel %vm3175_vm15, %v3086_v38, %v1513_v28  ;;  %vm1504_vm3 = vcmp.eq.f32.partialorder %v1503_v19, 8.507059e+37  ;;  %v2242_v28 = vld [vmem:[%s3329_s7 + $0x8] ss:$0 sm:$0xff] }
 0x9e3   : > { %1625 = vmatpush.msra.mxu3 %v1605_v33  ;;  %v1601_v5 = vsel %vm443_vm1, %v1590_v29, 0.0  ;;  %v1497_v7 = vmul.f32 %v3092_v55, %v1496_v6  ;;  %v1552_v4 = vsel %vm1549_vm6, %v1551_v1, %v1547_v62  ;;  %vm1489_vm7 = vcmp.eq.f32.partialorder %v1488_v57, 8.507059e+37  ;;  %v2147_v1 = vld [vmem:[%s3327_s5 + $0x20] sm:$0xff] }
 0x9e4   : > { %v1603_v14 = vadd.f32 %v1602_v36, %v1601_v5  ;;  %vm1534_vm8 = vcmp.eq.f32.partialorder %v1533_v30, 8.507059e+37  ;;  %vm1519_vm10 = vcmp.eq.f32.partialorder %v1518_v54, 8.507059e+37  ;;  %v1592_v38 = vsel %vm443_vm1, %v1584_v58, 0.0 }
 0x9e5   : > { %v1498_v45 = vadd.f32 %v3092_v55, %v1497_v7  ;;  %v1537_v17 = vsel %vm1534_vm8, %v1536_v46, %v1532_v22  ;;  %v1522_v18 = vsel %vm1519_vm10, %v1521_v59, %v1517_v50  ;;  %v2138_v7 = vld [vmem:[%s3326_s4 + $0x30] sm:$0xff] }
 0x9e6   : > { %v2322_v39 = vpop.eup %2321  ;;  %2135 = vmatmul.msk.f32.vlgmr.msrb.gmra.mxu2 %vm443_vm1, %v1603_v14  ;;  %v1588_v29 = vmul.f32 %v3021_v53, %v1537_v17  ;;  %v1587_v6 = vmul.f32 %v3031_v8, %v1522_v18  ;;  %v2139_v53 = vld [vmem:[%s3326_s4 + $0x38] sm:$0xff]  ;;  %v2136_v8 = vld [vmem:[%s3326_s4 + $0x20] sm:$0xff]  ;;  %v2243_v18 = vld [vmem:[%s3329_s7 + $0x9] ss:$0 sm:$0xff] }
 0x9e7   : > { %v1480_v41 = vmul.f32 %v2322_v39, %v3101_v10  ;;  %vm1485_vm4 = vweird.f32 %v2322_v39  ;;  %v1502_v49 = vsel %vm3159_vm14, %v3092_v55, %v1498_v45  ;;  %v1491_v55 = vor.u32 1.1754944e-38, %v1490_v25  ;;  %1804 = vmatpush.msra.mxu2 %v2139_v53  ;;  %1735 = vmatpush.msrb.mxu3 %v2136_v8  ;;  %v2157_v53 = vld [vmem:[%s3328_s6 + $0x60] sm:$0xff] }
 0x9e8   : > { %vm1486_vm9 = vmor %vm1484_vm5, %vm1485_vm4  ;;  %v1507_v9 = vsel %vm1504_vm3, %v1506_v2, %v1502_v49  ;;  %v1589_v10 = vmul.f32 %v3039_v26, %v1552_v4  ;;  %v1598_v5 = vsel %vm443_vm1, %v1588_v29, 0.0  ;;  %v2150_v49 = vld [vmem:[%s3327_s5 + $0x38] sm:$0xff]  ;;  %v2245_v29 = vld [vmem:[%s3329_s7 + $0xb] ss:$0 sm:$0xff] }
 0x9e9   : > { %v1481_v23 = vsub.f32 1.0, %v1480_v41  ;;  %v1586_v27 = vmul.f32 %v3046_v15, %v1507_v9  ;;  %v1596_v15 = vsel %vm443_vm1, %v1587_v6, 0.0 }
 0x9ea   : > { %v1599_v33 = vsel %vm443_vm1, %v1589_v10, 0.0 }
 0x9eb   : > { %v1482_v43 = vmul.f32 %v2322_v39, %v1481_v23  ;;  %v1595_v0 = vsel %vm443_vm1, %v1586_v27, 0.0  ;;  %v1600_v16 = vadd.f32 %v1599_v33, %v1598_v5  ;;  %v2244_v27 = vld [vmem:[%s3329_s7 + $0xa] ss:$0 sm:$0xff] }
 0x9ec   : > { %v1597_v36 = vadd.f32 %v1596_v15, %v1595_v0  ;;  %v2159_v15 = vld [vmem:[%s3328_s6 + $0x70] sm:$0xff] }
 0x9ed   : > { %v1483_v60 = vadd.f32 %v2322_v39, %v1482_v43 }
 0x9ef   : > { %v1487_v42 = vsel %vm1486_vm9, %v2322_v39, %v1483_v60 }
 0x9f0   : > { %v1492_v13 = vsel %vm1489_vm7, %v1491_v55, %v1487_v42 }
 0x9f1   : > { %v1585_v24 = vmul.f32 %v3050_v34, %v1492_v13 }
 0x9f3   : > { %v1593_v12 = vsel %vm443_vm1, %v1585_v24, 0.0 }
 0x9f4   : > { %v1594_v31 = vadd.f32 %v1593_v12, %v1592_v38 }
 0x9f6   : > { %2132 = vmatmul.msk.f32.vlgmr.msra.gmra.mxu3 %vm443_vm1, %v1594_v31 }
 0x9f7   : > { %v2224_v34 = vpop.permute.xlu1 %2223  ;;  %1871 = vmatpush.msra.mxu3 %v2150_v49 }
 0x9f8   : > { %v2226_v40 = vunpack.i.h.bf16 %v2224_v34  ;;  %v2225_v26 = vunpack.i.l.bf16 %v2224_v34 }
 0x9f9   : > { %1872 = vmatpush.msra.mxu3 %v2149_v63  ;;  %v2246_v63 = vld [vmem:[%s3329_s7 + $0xc] ss:$0 sm:$0xff] }
 0x9fa   : > { %1651 = vmatpush.msra.mxu0 %v2225_v26  ;;  %1677 = vmatpush.msrb.mxu1 %v2226_v40  ;;  %v2160_v26 = vld [vmem:[%s3328_s6 + $0x78] sm:$0xff] }
 0x9fb   : > { %2133 = vmatmul.msk.f32.vlgmr.msra.gmra.mxu0 %vm443_vm1, %v1597_v36  ;;  %2134 = vmatmul.msk.f32.vlgmr.msrb.gmra.mxu1 %vm443_vm1, %v1600_v16  ;;  %v2158_v36 = vld [vmem:[%s3328_s6 + $0x68] sm:$0xff] }
 0x9fc   : > { %1758 = vmatpush.msrb.mxu0 %v2137_v20  ;;  %1781 = vmatpush.msra.mxu1 %v2138_v7  ;;  %v2156_v7 = vld [vmem:[%s3328_s6 + $0x58] sm:$0xff] }
 0x9fe   : > { %1941 = vmatpush.msra.mxu0 %v2160_v26 }
 0xa00   : > { %1942 = vmatpush.msra.mxu0 %v2159_v15 }
 0xa02   : > { %1943 = vmatpush.msra.mxu0 %v2158_v36 }
 0xa04   : > { %1944 = vmatpush.msra.mxu0 %v2157_v53 }
 0xa06   : > { %1945 = vmatpush.msra.mxu0 %v2156_v7 }
 0xa69   : > { %v1705_v14 = vpop.f32.mrf.mxu2 }
 0xa6a   : > { %v1711_v44 = vmul.f32 0.70710677, %v1705_v14 }
 0xa6c   : > { %2143 = vmatmul.msk.f32.vlgmr.msra.gmra.mxu2 %vm443_vm1, %v1711_v44 }
 0xa78   : > { %v1653_v30 = vpop.f32.mrf.mxu0  ;;  %v1679_v46 = vpop.f32.mrf.mxu1 }
 0xa79   : > { %v1709_v47 = vmul.f32 0.70710677, %v1653_v30  ;;  %v1710_v39 = vmul.f32 0.70710677, %v1679_v46  ;;  %v1627_v22 = vpop.f32.mrf.mxu3  ;;  %v2155_v30 = vld [vmem:[%s3328_s6 + $0x50] sm:$0xff]  ;;  %v2154_v46 = vld [vmem:[%s3328_s6 + $0x48] sm:$0xff] }
 0xa7a   : > { %v1708_v21 = vmul.f32 0.70710677, %v1627_v22  ;;  %1946 = vmatpush.msra.mxu0 %v2155_v30  ;;  %v2153_v22 = vld [vmem:[%s3328_s6 + $0x40] sm:$0xff] }
 0xa7b   : > { %2141 = vmatmul.msk.f32.vlgmr.msrb.gmra.mxu0 %vm443_vm1, %v1709_v47  ;;  %2142 = vmatmul.msk.f32.vlgmr.msra.gmra.mxu1 %vm443_vm1, %v1710_v39 }
 0xa7c   : > { %2140 = vmatmul.msk.f32.vlgmr.msrb.gmra.mxu3 %vm443_vm1, %v1708_v21  ;;  %1947 = vmatpush.msra.mxu0 %v2154_v46 }
 0xa7e   : > { %1948 = vmatpush.msra.mxu0 %v2153_v22 }
 0xaef   : > { %v1806_v11 = vpop.f32.mrf.mxu2 }
 0xaf0   : > { %v1814_v52 = vsel %vm356_vm0, %v1806_v11, 0.0 }
 0xaf8   : > { %v1760_v37 = vpop.f32.mrf.mxu0  ;;  %v1783_v32 = vpop.f32.mrf.mxu1 }
 0xaf9   : > { %v1810_v48 = vsel %vm356_vm0, %v1760_v37, 0.0  ;;  %v1812_v51 = vsel %vm356_vm0, %v1783_v32, 0.0 }
 0xaff   : > { %v1737_v41 = vpop.f32.mrf.mxu3 }
 0xb00   : > { %v1809_v45 = vsel %vm356_vm0, %v1737_v41, 0.0 }
 0xb01   : > { %v1811_v35 = vadd.f32 %v1810_v48, %v1809_v45 }
 0xb03   : > { %v1813_v23 = vadd.f32 %v1812_v51, %v1811_v35 }
 0xb05   : > { %v1815_v19 = vadd.f32 %v1814_v52, %v1813_v23 }
 0xb07   : > { %v1819_v25 = vadd.f32 %v2242_v28, %v1815_v19 }
 0xb09   : > { %v1820_v54 = vadd.f32 %v1819_v25, %v2953_v3  ;;  %v2148_v3 = vld [vmem:[%s3327_s5 + $0x28] sm:$0xff] }
 0xb0a   : > { %1873 = vmatpush.msra.mxu3 %v2148_v3 }
 0xb0b   : > { %v1823_v56 = vsel %vm356_vm0, %v1820_v54, 0.0 }
 0xb0c   : > { %1824 = vadd.xlane.f32.xlu0 %v1823_v56  ;;  %1874 = vmatpush.msra.mxu3 %v2147_v1 }
 0xb7f   : > { %v1825_v43 = vpop.xlane.xlu0 %1824 }
 0xb80   : > { %v1826_v57 = vmul.f32 %v1825_v43, %v2836_v61 }
 0xb82   : > { %v1827_v58 = vsub.f32 %v1820_v54, %v1826_v57 }
 0xb84   : > { %v1828_v59 = vmul.f32 %v1827_v58, %v1827_v58 }
 0xb86   : > { %v1829_v62 = vsel %vm356_vm0, %v1828_v59, 0.0 }
 0xb87   : > { %1830 = vadd.xlane.f32.xlu2 %v1829_v62 }
 0xbfa   : > { %v1831_v2 = vpop.xlane.xlu2 %1830 }
 0xbfb   : > { %v1832_v60 = vmul.f32 %v1831_v2, %v2836_v61 }
 0xbfd   : > { %v1833_v50 = vadd.f32 1e-12, %v1832_v60 }
 0xbff   : > { %2323 = vrsqrt.f32 %v1833_v50  ;;  %vm1840_vm11 = vweird.f32 %v1833_v50 }
 0xc05   : > { %v2324_v55 = vpop.eup %2323 }
 0xc06   : > { %v1835_v4 = vmul.f32 %v2324_v55, %v1833_v50  ;;  %vm1841_vm1 = vweird.f32 %v2324_v55 }
 0xc07   : > { %vm1842_vm12 = vmor %vm1840_vm11, %vm1841_vm1 }
 0xc08   : > { %v1836_v9 = vmul.f32 %v2324_v55, %v1835_v4 }
 0xc0a   : > { %v1837_v42 = vmul.f32 0.5, %v1836_v9 }
 0xc0c   : > { %v1838_v13 = vsub.f32 1.5, %v1837_v42 }
 0xc0e   : > { %v1839_v17 = vmul.f32 %v2324_v55, %v1838_v13 }
 0xc10   : > { %v1843_v24 = vsel %vm1842_vm12, %v2324_v55, %v1839_v17 }
 0xc11   : > { %v1844_v10 = vmul.f32 %v1843_v24, %v1827_v58 }
 0xc13   : > { %v1846_v38 = vmul.f32 %v2243_v18, %v1844_v10 }
 0xc15   : > { %v3243_v12 = vadd.f32 %v2244_v27, %v1846_v38 }
 0xc17   : > { %2152 = vmatmul.msk.f32.vlgmr.msra.gmra.mxu3 %vm356_vm0, %v3243_v12 }
 0xc9a   : > { %v1876_v6 = vpop.f32.mrf.mxu3 }
 0xc9b   : > { %v1877_v31 = vadd.f32 %v2245_v29, %v1876_v6  ;;  %v2247_v6 = vld [vmem:[%s3329_s7 + $0xd] ss:$0 sm:$0xff] }
 0xc9d   : > { %v1880_v0 = vmul.f32 0.70710677, %v1877_v31  ;;  %v1879_v59 = vmul.f32 0.5, %v1877_v31 }
 0xc9f   : > { %v1881_v33 = vand.u32 2147483647, %v1880_v0  ;;  %vm1914_vm5 = vcmp.ge.f32.partialorder %v1880_v0, 0.0  ;;  %v2248_v0 = vld [vmem:[%s3329_s7 + $0xe] ss:$0 sm:$0xff] }
 0xca1   : > { %v1882_v34 = vmul.f32 0.3275911, %v1881_v33  ;;  %v1908_v32 = vsub.f32 0.0, %v1881_v33 }
 0xca3   : > { %v1883_v40 = vadd.f32 1.0, %v1882_v34  ;;  %v1909_v45 = vmul.f32 %v1908_v32, %v1881_v33 }
 0xca5   : > { %2325 = vrcp.f32 %v1883_v40  ;;  %v1895_v20 = vand.u32 2147483648, %v1883_v40  ;;  %v1893_v44 = vand.u32 2147483647, %v1883_v40  ;;  %vm1889_vm14 = vweird.f32 %v1883_v40 }
 0xca6   : > { %v1910_v51 = vmul.f32 1.442695, %v1909_v45 }
 0xca7   : > { %v1896_v39 = vor.u32 1.1754944e-38, %v1895_v20  ;;  %vm1894_vm15 = vcmp.eq.f32.partialorder %v1893_v44, 8.507059e+37 }
 0xca8   : > { %2327 = vpow2.f32 %v1910_v51 }
 0xcab   : > { %v2326_v5 = vpop.eup %2325 }
 0xcac   : > { %v1885_v16 = vmul.f32 %v2326_v5, %v1883_v40  ;;  %vm1890_vm13 = vweird.f32 %v2326_v5 }
 0xcad   : > { %vm1891_vm4 = vmor %vm1889_vm14, %vm1890_vm13 }
 0xcae   : > { %v1886_v8 = vsub.f32 1.0, %v1885_v16  ;;  %v2328_v54 = vpop.eup %2327 }
 0xcb0   : > { %v1887_v14 = vmul.f32 %v2326_v5, %v1886_v8 }
 0xcb2   : > { %v1888_v47 = vadd.f32 %v2326_v5, %v1887_v14 }
 0xcb4   : > { %v1892_v21 = vsel %vm1891_vm4, %v2326_v5, %v1888_v47 }
 0xcb5   : > { %v1897_v37 = vsel %vm1894_vm15, %v1896_v39, %v1892_v21 }
 0xcb6   : > { %v1899_v41 = vmul.f32 1.0614054, %v1897_v37 }
 0xcb8   : > { %v1900_v48 = vadd.f32 -1.4531521, %v1899_v41 }
 0xcba   : > { %v1901_v11 = vmul.f32 %v1900_v48, %v1897_v37 }
 0xcbc   : > { %v1902_v35 = vadd.f32 1.4214138, %v1901_v11 }
 0xcbe   : > { %v1903_v23 = vmul.f32 %v1902_v35, %v1897_v37 }
 0xcc0   : > { %v1904_v28 = vadd.f32 -0.28449672, %v1903_v23 }
 0xcc2   : > { %v1905_v52 = vmul.f32 %v1904_v28, %v1897_v37 }
 0xcc4   : > { %v1906_v19 = vadd.f32 0.2548296, %v1905_v52 }
 0xcc6   : > { %v1907_v25 = vmul.f32 %v1906_v19, %v1897_v37 }
 0xcc8   : > { %v1912_v56 = vmul.f32 %v2328_v54, %v1907_v25 }
 0xcca   : > { %v1913_v43 = vsub.f32 1.0, %v1912_v56 }
 0xccc   : > { %v1915_v57 = vsub.f32 0.0, %v1913_v43 }
 0xcce   : > { %v1916_v58 = vsel %vm1914_vm5, %v1913_v43, %v1915_v57 }
 0xccf   : > { %v1917_v62 = vadd.f32 1.0, %v1916_v58 }
 0xcd1   : > { %v1918_v49 = vmul.f32 %v1917_v62, %v1879_v59 }
 0xcd3   : > { %2162 = vmatmul.msk.f32.vlgmr.msra.gmra.mxu0 %vm1102_vm2, %v1918_v49 }
 0xd50   : > { %v1950_v3 = vpop.f32.mrf.mxu0 }
 0xd51   : > { %v1951_v1 = vadd.f32 %v2246_v63, %v1950_v3 }
 0xd53   : > { %v1953_v2 = vadd.f32 %v1951_v1, %v3243_v12 }
 0xd55   : > { %v1956_v60 = vsel %vm356_vm0, %v1953_v2, 0.0 }
 0xd56   : > { %1957 = vadd.xlane.f32.xlu1 %v1956_v60 }
 0xdc9   : > { %v1958_v50 = vpop.xlane.xlu1 %1957 }
 0xdca   : > { %v1959_v55 = vmul.f32 %v1958_v50, %v2836_v61 }
 0xdcc   : > { %v1960_v4 = vsub.f32 %v1953_v2, %v1959_v55 }
 0xdce   : > { %v1961_v9 = vmul.f32 %v1960_v4, %v1960_v4 }
 0xdd0   : > { %v1962_v42 = vsel %vm356_vm0, %v1961_v9, 0.0 }
 0xdd1   : > { %1963 = vadd.xlane.f32.xlu0 %v1962_v42 }
 0xe44   : > { %v1964_v13 = vpop.xlane.xlu0 %1963 }
 0xe45   : > { %v1965_v17 = vmul.f32 %v1964_v13, %v2836_v61 }
 0xe47   : > { %v1966_v18 = vadd.f32 1e-12, %v1965_v17 }
 0xe49   : > { %2329 = vrsqrt.f32 %v1966_v18  ;;  %vm1973_vm6 = vweird.f32 %v1966_v18 }
 0xe4f   : > { %v2330_v24 = vpop.eup %2329 }
 0xe50   : > { %v1968_v10 = vmul.f32 %v2330_v24, %v1966_v18  ;;  %vm1974_vm2 = vweird.f32 %v2330_v24 }
 0xe51   : > { %vm1975_vm3 = vmor %vm1973_vm6, %vm1974_vm2 }
 0xe52   : > { %v1969_v27 = vmul.f32 %v2330_v24, %v1968_v10 }
 0xe54   : > { %v1970_v38 = vmul.f32 0.5, %v1969_v27 }
 0xe56   : > { %v1971_v12 = vsub.f32 1.5, %v1970_v38 }
 0xe58   : > { %v1972_v29 = vmul.f32 %v2330_v24, %v1971_v12 }
 0xe5a   : > { %v1976_v61 = vsel %vm1975_vm3, %v2330_v24, %v1972_v29 }
 0xe5b   : > { %v1977_v31 = vmul.f32 %v1976_v61, %v1960_v4 }
 0xe5d   : > { %v1979_v33 = vmul.f32 %v2247_v6, %v1977_v31 }
 0xe5f   : > { %v1981_v34 = vadd.f32 %v2248_v0, %v1979_v33 }
 0xe61   : > { %1982 = vst.msk [vmem:[%s311_s18] sm:$0xff] %vm356_vm0, %v1981_v34 }
 0xe62   : > { %2359 = shalt.err (!%p2356_p3)
}
 0xe63   : > { %2170 = dma.vmem_to_hbm [thread:$0]  (%p2482_p5), %s1997_s9, 128, %s1999_s13, %s1984_s20  }
 0xe64 PF: > { %p2176_p4 = scmp.ge.s32.totalorder %s2394_s30, 2  ;;  %s2010_s25 = sand.u32 1, %s2382_s27  }
 0xe65   : > { %s2011_s23 = scalar_lea.sflag [#allocation3], %s2010_s25 }
 0xe66   : > { %p2173_p7 = pnand %p2176_p4, %p2486_p6 }
 0xe68   : > { %p2174_p8 = pneg %p2173_p7 }
 0xe6a   : > { %2377 = dma.done.wait (%p2174_p8), %s2011_s23, 128  }
 0xe6b   : > { %2379 = vsyncadd (%p2174_p8), %s2011_s23, 4294967168  ;;  %p18_p9 = scmp.ge.s32.totalorder %s2469_s11, 4   ;;  %s3357_s27 = smov %s2386_s28 }
 0xe6c   : > { %s3358_s28 = smov %s2390_s29  ;;  %s3359_s29 = smov %s2480_s14 }
 0xe6d   : > { %s3360_s30 = smov %s2469_s11  ;;  %20 = sbr.rel (!%p18_p9) target bundleno = 3 (0x3), region = 96 }
 0xe72   :  { %2017 = vsyncpa [#allocation3], 1 }
 0xe73   :  { %2019 = vsyncpa [#allocation3 + $0x1], 1 }

</bundles_post_ra>
